<compile_context>
chip_gen: v7x
topology: tpu7x:2x2x1
jax: 0.10.0
libtpu: 0.0.40
codegen_flags: <defaults>
</compile_context>

<pallas_src>
import functools
import math

import jax
import jax.numpy as jnp
import numpy as np
from jax import lax
from jax.experimental import pallas as pl
from jax.experimental.pallas import tpu as pltpu


def _attn_kernel(*refs, heads_per_block, head_dim, q_tile, shared_qkv,
                 has_mask, mask_per_head, compute_dtype, exp_dtype):
    """One grid step == (one batch element, one head group, one query tile)."""
    idx = 0
    if shared_qkv:
        x_ref = refs[idx]; idx += 1
    else:
        q_ref, k_ref, v_ref = refs[idx:idx + 3]; idx += 3
    w_ref, b_ref = refs[idx:idx + 2]; idx += 2
    mask_ref = None
    if has_mask:
        mask_ref = refs[idx]; idx += 1
    ctx_ref, scores_ref, scr = refs[idx:idx + 3]

    G, D = heads_per_block, head_dim
    GD = G * D
    Tq = q_tile
    S = scr.shape[0]
    qt = pl.program_id(2)
    inv_sqrt_d = jnp.float32(1.0 / math.sqrt(D))

    # ---- projections: K/V (and Q in the shared path) once per (b, group);
    #      persisted in VMEM scratch across the query-tile axis. ----
    if shared_qkv:
        @pl.when(qt == 0)
        def _project_qkv():
            # One fused (S,H)@(H,3*G*D) matmul: fills the MXU (N >= 384).
            qkv = jnp.dot(x_ref[...], w_ref[...],
                          preferred_element_type=jnp.float32) + b_ref[...]
            # Pre-scale Q (S*GD mul) instead of scaling every (Tq,S) score tile.
            scr[:, :GD] = (qkv[:, :GD] * inv_sqrt_d).astype(compute_dtype)
            scr[:, GD:] = qkv[:, GD:].astype(compute_dtype)

        if Tq == S:
            q_c = scr[:, :GD]
        else:
            row0 = pl.multiple_of(qt * Tq, Tq)
            q_c = scr[pl.ds(row0, Tq), 0:GD]
        k_off, v_off = GD, 2 * GD
    else:
        @pl.when(qt == 0)
        def _project_kv():
            k = jnp.dot(k_ref[...], w_ref[:, GD:2 * GD],
                        preferred_element_type=jnp.float32) + b_ref[:, GD:2 * GD]
            v = jnp.dot(v_ref[...], w_ref[:, 2 * GD:],
                        preferred_element_type=jnp.float32) + b_ref[:, 2 * GD:]
            scr[:, :GD] = k.astype(compute_dtype)
            scr[:, GD:] = v.astype(compute_dtype)

        q = (jnp.dot(q_ref[...], w_ref[:, :GD],
                     preferred_element_type=jnp.float32)
             + b_ref[:, :GD]) * inv_sqrt_d
        q_c = q.astype(compute_dtype)
        k_off, v_off = 0, GD

    k_c = scr[:, k_off:k_off + GD]
    v_c = scr[:, v_off:v_off + GD]

    # Head-broadcast mask: build the additive (-9999) form once per step.
    mask_add = None
    if mask_ref is not None and not mask_per_head:
        mask_add = mask_ref[0].astype(jnp.float32) * jnp.float32(-9999.0)

    ctx_parts = []
    for h in range(G):                       # small static loop (G is 1-4)
        lo, hi = h * D, (h + 1) * D
        qh = q_c[:, lo:hi]
        kh = k_c[:, lo:hi]
        vh = v_c[:, lo:hi]

        # QK^T in NT form: contract the last dims of both (no XLU transpose).
        s = lax.dot_general(qh, kh, (((1,), (1,)), ((), ())),
                            preferred_element_type=jnp.float32)
        if mask_ref is not None:
            if mask_per_head:
                s = s + mask_ref[h].astype(jnp.float32) * jnp.float32(-9999.0)
            else:
                s = s + mask_add

        scores_ref[h] = s.astype(scores_ref.dtype)

        # Numerically stable softmax; normalization applied AFTER PV so the
        # per-element multiply is (Tq, D), not (Tq, S).
        mx = jnp.max(s, axis=-1, keepdims=True)
        e = jnp.exp((s - mx).astype(exp_dtype))
        denom = jnp.sum(e, axis=-1, keepdims=True, dtype=jnp.float32)
        # TODO(synk): nn.Dropout(attention_probs) omitted (eval mode).
        ctx_h = jnp.dot(e.astype(compute_dtype), vh,
                        preferred_element_type=jnp.float32)
        ctx_parts.append(ctx_h * pl.reciprocal(denom, approx=True))

    # Single lane-dense full-width store (>=128 lanes even when D == 64).
    ctx = ctx_parts[0] if G == 1 else jnp.concatenate(ctx_parts, axis=-1)
    ctx_ref[...] = ctx.astype(ctx_ref.dtype)


def _pick_heads_per_block(num_heads, head_dim):
    """Smallest head group whose lane width (g*head_dim) is 128-aligned."""
    if head_dim % 128 == 0:
        return 1
    for g in range(1, num_heads + 1):
        if num_heads % g == 0 and (g * head_dim) % 128 == 0:
            return g
    return num_heads


def _pick_q_tile(seq_len):
    """Query-tile size: full S when small, else a 128-aligned tile that
    bounds per-step VMEM (v7x has only 64 MiB)."""
    if seq_len <= 512:
        return seq_len
    for t in (512, 256, 128):
        if seq_len % t == 0:
            return t
    return seq_len


def _default_vmem_limit():
    """Per-generation VMEM budget (v5e/v6e: 128 MiB, v7x: 64 MiB)."""
    cap = None
    try:
        cap = getattr(pltpu.get_tpu_info(), "vmem_capacity_bytes", None)
    except Exception:
        cap = None
    if not cap:
        cap = 64 * 1024 * 1024
    return max(32 * 1024 * 1024, min(int(cap * 0.8), 110 * 1024 * 1024))


def _default_exp_dtype():
    """bf16 transcendentals only on v6e/v7x (v5e and older: f32 EUP only)."""
    try:
        kind = jax.devices()[0].device_kind.lower()
    except Exception:
        kind = ""
    return jnp.bfloat16 if ("v6" in kind or "v7" in kind) else jnp.float32


def bert_self_attention(q_in, k_in, v_in, params, num_heads, attn_mask=None, *,
                        compute_dtype=jnp.bfloat16,
                        scores_dtype=jnp.bfloat16,
                        q_tile=None,
                        exp_dtype=None):
    """params = dict(wq, bq, wk, bk, wv, bv); weights (H, H), biases (H,).

    attn_mask is boolean-style (nonzero == masked with -9999), matching the
    torch module's masked_fill_ contract; shapes (S,S), (B,S,S), (B*nH,S,S) or
    (B,nH,S,S) are accepted."""
    B, S, H = q_in.shape
    if H % num_heads != 0:
        raise ValueError("hidden size must be a multiple of num_heads")
    D = H // num_heads
    G = _pick_heads_per_block(num_heads, D)
    GD = G * D
    n_groups = num_heads // G
    Tq = int(q_tile) if q_tile is not None else _pick_q_tile(S)
    if S % Tq != 0:
        raise ValueError("q_tile must divide the sequence length")
    n_qt = S // Tq
    if exp_dtype is None:
        exp_dtype = _default_exp_dtype()

    # Dedupe inputs for true self-attention: one hidden block instead of three.
    shared_qkv = (q_in is k_in) and (q_in is v_in)

    # Fused per-group QKV weights: columns [Wq_g | Wk_g | Wv_g], group-major.
    def _group_w(w):
        return jnp.asarray(w).astype(compute_dtype).reshape(H, n_groups, GD)

    wqkv = jnp.stack([_group_w(params["wq"]), _group_w(params["wk"]),
                      _group_w(params["wv"])], axis=2).reshape(H, n_groups * 3 * GD)

    def _group_b(b):
        return jnp.asarray(b).astype(jnp.float32).reshape(n_groups, GD)

    bqkv = jnp.stack([_group_b(params["bq"]), _group_b(params["bk"]),
                      _group_b(params["bv"])], axis=1).reshape(n_groups, 1, 3 * GD)

    # Compact int8 mask (0/1); expanded to the additive -9999 form in-kernel.
    mask = None
    mask_per_head = False
    if attn_mask is not None:
        m = jnp.asarray(attn_mask)
        if m.size == S * S:
            mask = jnp.broadcast_to(m.reshape(1, 1, S, S) != 0,
                                    (B, 1, S, S)).astype(jnp.int8)
        elif m.size == B * S * S:
            mask = (m.reshape(B, 1, S, S) != 0).astype(jnp.int8)
        elif m.size == B * num_heads * S * S:
            mask = (m.reshape(B, num_heads, S, S) != 0).astype(jnp.int8)
            mask_per_head = True
        else:
            raise ValueError("attn_mask must reshape to (S,S), (B,S,S) or (B,nH,S,S)")

    in_specs = []
    args = []
    if shared_qkv:
        in_specs.append(pl.BlockSpec((pl.Squeezed(), S, H), lambda b, g, t: (b, 0, 0)))
        args.append(q_in.astype(compute_dtype))
    else:
        in_specs.append(pl.BlockSpec((pl.Squeezed(), Tq, H), lambda b, g, t: (b, t, 0)))
        in_specs.append(pl.BlockSpec((pl.Squeezed(), S, H), lambda b, g, t: (b, 0, 0)))
        in_specs.append(pl.BlockSpec((pl.Squeezed(), S, H), lambda b, g, t: (b, 0, 0)))
        args.extend([q_in.astype(compute_dtype), k_in.astype(compute_dtype),
                     v_in.astype(compute_dtype)])
    in_specs.append(pl.BlockSpec((H, 3 * GD), lambda b, g, t: (0, g)))           # Wqkv
    args.append(wqkv)
    in_specs.append(pl.BlockSpec((pl.Squeezed(), 1, 3 * GD), lambda b, g, t: (g, 0, 0)))  # bqkv
    args.append(bqkv)
    if mask is not None:
        if mask_per_head:
            in_specs.append(pl.BlockSpec((pl.Squeezed(), G, Tq, S),
                                         lambda b, g, t: (b, g, t, 0)))
        else:
            in_specs.append(pl.BlockSpec((pl.Squeezed(), 1, Tq, S),
                                         lambda b, g, t: (b, 0, t, 0)))
        args.append(mask)

    out_specs = [
        # Lane-dense per-group context slab; torch permute+view done in wrapper.
        pl.BlockSpec((pl.Squeezed(), pl.Squeezed(), Tq, GD),
                     lambda b, g, t: (b, g, t, 0)),
        pl.BlockSpec((pl.Squeezed(), G, Tq, S), lambda b, g, t: (b, g, t, 0)),
    ]
    out_shape = [
        jax.ShapeDtypeStruct((B, n_groups, S, GD), jnp.float32),
        jax.ShapeDtypeStruct((B, num_heads, S, S), scores_dtype),
    ]
    scr_cols = 3 * GD if shared_qkv else 2 * GD
    scratch_shapes = [pltpu.VMEM((S, scr_cols), compute_dtype)]

    kernel = functools.partial(
        _attn_kernel, heads_per_block=G, head_dim=D, q_tile=Tq,
        shared_qkv=shared_qkv, has_mask=mask is not None,
        mask_per_head=mask_per_head, compute_dtype=compute_dtype,
        exp_dtype=exp_dtype)

    ctx_groups, scores = pl.pallas_call(
        kernel,
        grid_spec=pltpu.PrefetchScalarGridSpec(
            num_scalar_prefetch=0,
            grid=(B, n_groups, n_qt),
            in_specs=in_specs,
            out_specs=out_specs,
            scratch_shapes=scratch_shapes,
        ),
        out_shape=out_shape,
        compiler_params=pltpu.CompilerParams(
            # q-tile axis is 'arbitrary': the projection scratch carries state
            # across it; (batch, group) stay 'parallel' for megacore sharding.
            dimension_semantics=("parallel", "parallel", "arbitrary"),
            vmem_limit_bytes=_default_vmem_limit(),
        ),
    )(*args)

    # torch: permute(0,2,1,3).contiguous().view(B, S, H) — layout plumbing only.
    ctx = (ctx_groups.reshape(B, n_groups, S, G, D)
                     .transpose(0, 2, 1, 3, 4)
                     .reshape(B, S, H))
    return ctx, scores


def _reference(q_in, k_in, v_in, params, num_heads, mask=None):
    """Plain-JAX f32 reference mirroring the torch forward (eval mode).
    `mask` is an optional boolean array of shape (B, nH, S, S)."""
    B, S, H = q_in.shape
    D = H // num_heads
    q = q_in @ params["wq"] + params["bq"]
    k = k_in @ params["wk"] + params["bk"]
    v = v_in @ params["wv"] + params["bv"]

    def split(x):  # (B,S,H) -> (B,nH,S,D)
        return x.reshape(B, S, num_heads, D).transpose(0, 2, 1, 3)

    qh, kh, vh = split(q), split(k), split(v)
    scores = jnp.einsum("bhqd,bhkd->bhqk", qh, kh) / math.sqrt(D)
    if mask is not None:
        scores = scores + jnp.where(mask, -9999.0, 0.0)
    probs = jax.nn.softmax(scores, axis=-1)
    ctx = jnp.einsum("bhqk,bhkd->bhqd", probs, vh)
    ctx = ctx.transpose(0, 2, 1, 3).reshape(B, S, H)
    return ctx, scores


if __name__ == "__main__":
    tol = dict(rtol=3e-2, atol=3e-2)   # bf16 MXU operands / bf16 scores output

    def make_params(key, H):
        ks = jax.random.split(key, 6)
        scale = 1.0 / math.sqrt(H)
        return {
            "wq": jax.random.uniform(ks[0], (H, H), jnp.float32, -scale, scale),
            "bq": jax.random.uniform(ks[1], (H,), jnp.float32, -scale, scale),
            "wk": jax.random.uniform(ks[2], (H, H), jnp.float32, -scale, scale),
            "bk": jax.random.uniform(ks[3], (H,), jnp.float32, -scale, scale),
            "wv": jax.random.uniform(ks[4], (H, H), jnp.float32, -scale, scale),
            "bv": jax.random.uniform(ks[5], (H,), jnp.float32, -scale, scale),
        }

    def check(ctx, sc, ctx_ref, sc_ref):
        np.testing.assert_allclose(np.asarray(ctx, dtype=np.float32),
                                   np.asarray(ctx_ref, dtype=np.float32), **tol)
        np.testing.assert_allclose(np.asarray(sc.astype(jnp.float32)),
                                   np.asarray(sc_ref, dtype=np.float32), **tol)

    root = jax.random.PRNGKey(0)

    # ---- Case A: D=128 (G=1), self-attention; compact / full / no mask ----
    B, S, H, NH = 2, 128, 256, 2
    kA, kP = jax.random.split(jax.random.fold_in(root, 1))
    x = jax.random.normal(kA, (B, S, H), jnp.float32)
    params = make_params(kP, H)
    tri = jnp.triu(jnp.ones((S, S), bool), k=1)
    mask_full = jnp.broadcast_to(tri, (B, NH, S, S))

    ctx_ref_m, sc_ref_m = _reference(x, x, x, params, NH, mask_full)
    ctx_ref_0, sc_ref_0 = _reference(x, x, x, params, NH, None)

    ctx1, sc1 = bert_self_attention(x, x, x, params, NH, attn_mask=tri)
    ctx2, sc2 = bert_self_attention(x, x, x, params, NH, attn_mask=mask_full)
    ctx3, sc3 = bert_self_attention(x, x, x, params, NH, attn_mask=None)
    jax.block_until_ready((ctx1, sc1, ctx2, sc2, ctx3, sc3))
    check(ctx1, sc1, ctx_ref_m, sc_ref_m)
    check(ctx2, sc2, ctx_ref_m, sc_ref_m)
    check(ctx3, sc3, ctx_ref_0, sc_ref_0)

    # ---- Case B: D=64 (G=2, lane-dense grouped context), self-attention ----
    B, S, H, NH = 2, 128, 256, 4
    kB, kP = jax.random.split(jax.random.fold_in(root, 2))
    xb = jax.random.normal(kB, (B, S, H), jnp.float32)
    params_b = make_params(kP, H)
    tri_b = jnp.triu(jnp.ones((S, S), bool), k=1)
    mask_b = jnp.broadcast_to(tri_b, (B, NH, S, S))
    ctx_ref_b, sc_ref_b = _reference(xb, xb, xb, params_b, NH, mask_b)
    ctx4, sc4 = bert_self_attention(xb, xb, xb, params_b, NH, attn_mask=tri_b)
    jax.block_until_ready((ctx4, sc4))
    check(ctx4, sc4, ctx_ref_b, sc_ref_b)

    # ---- Case C: query tiling (Tq=128 over S=256), self-attention + mask ----
    B, S, H, NH = 1, 256, 256, 2
    kC, kP = jax.random.split(jax.random.fold_in(root, 3))
    xc = jax.random.normal(kC, (B, S, H), jnp.float32)
    params_c = make_params(kP, H)
    tri_c = jnp.triu(jnp.ones((S, S), bool), k=1)
    mask_c = jnp.broadcast_to(tri_c, (B, NH, S, S))
    ctx_ref_c, sc_ref_c = _reference(xc, xc, xc, params_c, NH, mask_c)
    ctx5, sc5 = bert_self_attention(xc, xc, xc, params_c, NH,
                                    attn_mask=tri_c, q_tile=128)
    jax.block_until_ready((ctx5, sc5))
    check(ctx5, sc5, ctx_ref_c, sc_ref_c)

    # ---- Case D: cross-attention path (distinct q/k/v) with query tiling ----
    kD = jax.random.fold_in(root, 4)
    kq, kk, kv, kP = jax.random.split(kD, 4)
    q_in = jax.random.normal(kq, (B, S, H), jnp.float32)
    k_in = jax.random.normal(kk, (B, S, H), jnp.float32)
    v_in = jax.random.normal(kv, (B, S, H), jnp.float32)
    params_d = make_params(kP, H)
    ctx_ref_d, sc_ref_d = _reference(q_in, k_in, v_in, params_d, NH, None)
    ctx6, sc6 = bert_self_attention(q_in, k_in, v_in, params_d, NH,
                                    attn_mask=None, q_tile=128)
    jax.block_until_ready((ctx6, sc6))
    check(ctx6, sc6, ctx_ref_d, sc_ref_d)

    print("KERNEL_OK")
</pallas_src>

<mosaic_0001>
module attributes {stable_mosaic.version = 11 : i64} {
  func.func @_attn_kernel(%arg0: i32, %arg1: i32, %arg2: i32, %arg3: memref<1x128x256xbf16, #tpu.memory_space<vmem>>, %arg4: memref<256x384xbf16, #tpu.memory_space<vmem>>, %arg5: memref<1x1x384xf32, #tpu.memory_space<vmem>>, %arg6: memref<1x1x128x128xi8, #tpu.memory_space<vmem>>, %arg7: memref<1x1x128x128xf32, #tpu.memory_space<vmem>>, %arg8: memref<1x1x128x128xbf16, #tpu.memory_space<vmem>>, %arg9: memref<128x384xbf16, #tpu.memory_space<vmem>>) attributes {dimension_semantics = [#tpu.dimension_semantics<parallel>, #tpu.dimension_semantics<parallel>, #tpu.dimension_semantics<arbitrary>], iteration_bounds = array<i64: 2, 2, 1>, scalar_prefetch = 0 : i64, scratch_operands = 1 : i64, tpu.core_type = #tpu.core_type<tc>, window_params = [{transform_indices = @transform_0, window_bounds = array<i64: 1, 128, 256>}, {transform_indices = @transform_1, window_bounds = array<i64: 256, 384>}, {transform_indices = @transform_2, window_bounds = array<i64: 1, 1, 384>}, {transform_indices = @transform_3, window_bounds = array<i64: 1, 1, 128, 128>}, {transform_indices = @transform_4, window_bounds = array<i64: 1, 1, 128, 128>}, {transform_indices = @transform_5, window_bounds = array<i64: 1, 1, 128, 128>}]} {
    %c0_i32 = arith.constant 0 : i32
    %0 = arith.cmpi eq, %arg2, %c0_i32 : i32
    %1 = arith.extui %0 : i1 to i32
    %cst = arith.constant 0.0883883461 : f32
    %c0_i32_0 = arith.constant 0 : i32
    %2 = arith.cmpi ne, %1, %c0_i32_0 : i32
    scf.if %2 {
      %c0_21 = arith.constant 0 : index
      %c0_22 = arith.constant 0 : index
      %c0_23 = arith.constant 0 : index
      %32 = vector.load %arg3[%c0_21, %c0_22, %c0_23] : memref<1x128x256xbf16, #tpu.memory_space<vmem>>, vector<1x128x256xbf16>
      %33 = vector.shape_cast %32 : vector<1x128x256xbf16> to vector<128x256xbf16>
      %c0_24 = arith.constant 0 : index
      %c0_25 = arith.constant 0 : index
      %34 = vector.load %arg4[%c0_24, %c0_25] : memref<256x384xbf16, #tpu.memory_space<vmem>>, vector<256x384xbf16>
      %cst_26 = arith.constant dense<0.000000e+00> : vector<128x384xf32>
      %35 = tpu.matmul %33, %34, %cst_26 {dimension_numbers = #tpu.dot_dimension_numbers<[1], [0], [0], [1], [0, 0, 1, 1], [], []>} : vector<128x256xbf16>, vector<256x384xbf16>, vector<128x384xf32> -> vector<128x384xf32>
      %c0_27 = arith.constant 0 : index
      %c0_28 = arith.constant 0 : index
      %c0_29 = arith.constant 0 : index
      %36 = vector.load %arg5[%c0_27, %c0_28, %c0_29] : memref<1x1x384xf32, #tpu.memory_space<vmem>>, vector<1x1x384xf32>
      %37 = vector.shape_cast %36 : vector<1x1x384xf32> to vector<1x384xf32>
      %38 = vector.broadcast %37 : vector<1x384xf32> to vector<128x384xf32>
      %39 = arith.addf %35, %38 : vector<128x384xf32>
      %40 = vector.extract_strided_slice %39 {offsets = [0, 0], sizes = [128, 128], strides = [1, 1]} : vector<128x384xf32> to vector<128x128xf32>
      %41 = vector.broadcast %cst : f32 to vector<128x128xf32>
      %42 = arith.mulf %40, %41 : vector<128x128xf32>
      %43 = arith.truncf %42 : vector<128x128xf32> to vector<128x128xbf16>
      %c0_30 = arith.constant 0 : index
      %c0_31 = arith.constant 0 : index
      %44 = vector.load %arg9[%c0_30, %c0_31] : memref<128x384xbf16, #tpu.memory_space<vmem>>, vector<128x128xbf16>
      tpu.vector_store %arg9[%c0_30, %c0_31], %43 {strides = array<i32>} : memref<128x384xbf16, #tpu.memory_space<vmem>>, vector<128x128xbf16>,
      %45 = vector.extract_strided_slice %39 {offsets = [0, 128], sizes = [128, 256], strides = [1, 1]} : vector<128x384xf32> to vector<128x256xf32>
      %46 = arith.truncf %45 : vector<128x256xf32> to vector<128x256xbf16>
      %c0_32 = arith.constant 0 : index
      %c128_33 = arith.constant 128 : index
      %47 = vector.load %arg9[%c0_32, %c128_33] : memref<128x384xbf16, #tpu.memory_space<vmem>>, vector<128x256xbf16>
      tpu.vector_store %arg9[%c0_32, %c128_33], %46 {strides = array<i32>} : memref<128x384xbf16, #tpu.memory_space<vmem>>, vector<128x256xbf16>,
    } else {
    }
    %c0 = arith.constant 0 : index
    %c0_1 = arith.constant 0 : index
    %3 = vector.load %arg9[%c0, %c0_1] : memref<128x384xbf16, #tpu.memory_space<vmem>>, vector<128x128xbf16>
    %c0_2 = arith.constant 0 : index
    %c128 = arith.constant 128 : index
    %4 = vector.load %arg9[%c0_2, %c128] : memref<128x384xbf16, #tpu.memory_space<vmem>>, vector<128x128xbf16>
    %c0_3 = arith.constant 0 : index
    %c256 = arith.constant 256 : index
    %5 = vector.load %arg9[%c0_3, %c256] : memref<128x384xbf16, #tpu.memory_space<vmem>>, vector<128x128xbf16>
    %c0_4 = arith.constant 0 : index
    %c0_5 = arith.constant 0 : index
    %c0_6 = arith.constant 0 : index
    %c0_7 = arith.constant 0 : index
    %6 = vector.load %arg6[%c0_4, %c0_5, %c0_6, %c0_7] : memref<1x1x128x128xi8, #tpu.memory_space<vmem>>, vector<1x1x128x128xi8>
    %7 = vector.shape_cast %6 : vector<1x1x128x128xi8> to vector<128x128xi8>
    %8 = arith.sitofp %7 : vector<128x128xi8> to vector<128x128xf32>
    %cst_8 = arith.constant -9.999000e+03 : f32
    %9 = vector.broadcast %cst_8 : f32 to vector<128x128xf32>
    %10 = arith.mulf %8, %9 : vector<128x128xf32>
    %cst_9 = arith.constant dense<0.000000e+00> : vector<128x128xf32>
    %11 = tpu.matmul %3, %4, %cst_9 {dimension_numbers = #tpu.dot_dimension_numbers<[1], [1], [0], [0], [0, 0, 1, 0], [], []>} : vector<128x128xbf16>, vector<128x128xbf16>, vector<128x128xf32> -> vector<128x128xf32>
    %12 = arith.addf %11, %10 : vector<128x128xf32>
    %13 = arith.truncf %12 : vector<128x128xf32> to vector<128x128xbf16>
    %c0_10 = arith.constant 0 : index
    %c0_11 = arith.constant 0 : index
    %c0_12 = arith.constant 0 : index
    %c0_13 = arith.constant 0 : index
    %14 = vector.load %arg8[%c0_10, %c0_11, %c0_12, %c0_13] : memref<1x1x128x128xbf16, #tpu.memory_space<vmem>>, vector<1x1x128x128xbf16>
    %15 = vector.shape_cast %14 : vector<1x1x128x128xbf16> to vector<128x128xbf16>
    %16 = vector.shape_cast %13 : vector<128x128xbf16> to vector<1x1x128x128xbf16>
    tpu.vector_store %arg8[%c0_10, %c0_11, %c0_12, %c0_13], %16 {strides = array<i32>} : memref<1x1x128x128xbf16, #tpu.memory_space<vmem>>, vector<1x1x128x128xbf16>,
    %cst_14 = arith.constant dense<0xFF800000> : vector<128xf32>
    %17 = vector.multi_reduction <maximumf>, %12, %cst_14 [1] : vector<128x128xf32> to vector<128xf32>
    %18 = vector.shape_cast %17 : vector<128xf32> to vector<128x1xf32>
    %19 = vector.broadcast %18 : vector<128x1xf32> to vector<128x128xf32>
    %20 = arith.subf %12, %19 : vector<128x128xf32>
    %21 = math.exp %20 : vector<128x128xf32>
    %cst_15 = arith.constant dense<0.000000e+00> : vector<128xf32>
    %22 = vector.multi_reduction <add>, %21, %cst_15 [1] : vector<128x128xf32> to vector<128xf32>
    %23 = vector.shape_cast %22 : vector<128xf32> to vector<128x1xf32>
    %24 = arith.truncf %21 : vector<128x128xf32> to vector<128x128xbf16>
    %cst_16 = arith.constant dense<0.000000e+00> : vector<128x128xf32>
    %25 = tpu.matmul %24, %5, %cst_16 {dimension_numbers = #tpu.dot_dimension_numbers<[1], [0], [0], [1], [0, 0, 1, 1], [], []>} : vector<128x128xbf16>, vector<128x128xbf16>, vector<128x128xf32> -> vector<128x128xf32>
    %26 = tpu.reciprocal %23 {approx = true} : vector<128x1xf32> -> vector<128x1xf32>
    %27 = vector.broadcast %26 : vector<128x1xf32> to vector<128x128xf32>
    %28 = arith.mulf %25, %27 : vector<128x128xf32>
    %c0_17 = arith.constant 0 : index
    %c0_18 = arith.constant 0 : index
    %c0_19 = arith.constant 0 : index
    %c0_20 = arith.constant 0 : index
    %29 = vector.load %arg7[%c0_17, %c0_18, %c0_19, %c0_20] : memref<1x1x128x128xf32, #tpu.memory_space<vmem>>, vector<1x1x128x128xf32>
    %30 = vector.shape_cast %29 : vector<1x1x128x128xf32> to vector<128x128xf32>
    %31 = vector.shape_cast %28 : vector<128x128xf32> to vector<1x1x128x128xf32>
    tpu.vector_store %arg7[%c0_17, %c0_18, %c0_19, %c0_20], %31 {strides = array<i32>} : memref<1x1x128x128xf32, #tpu.memory_space<vmem>>, vector<1x1x128x128xf32>,
    return
  }
  func.func @transform_0(%arg0: i32, %arg1: i32, %arg2: i32) -> (i32, i32, i32) {
    %c0_i32 = arith.constant 0 : i32
    %c0_i32_0 = arith.constant 0 : i32
    %c0_i32_1 = arith.constant 0 : i32
    return %arg0, %c0_i32, %c0_i32_0 : i32, i32, i32
  }
  func.func @transform_1(%arg0: i32, %arg1: i32, %arg2: i32) -> (i32, i32) {
    %c0_i32 = arith.constant 0 : i32
    %c0_i32_0 = arith.constant 0 : i32
    return %c0_i32, %arg1 : i32, i32
  }
  func.func @transform_2(%arg0: i32, %arg1: i32, %arg2: i32) -> (i32, i32, i32) {
    %c0_i32 = arith.constant 0 : i32
    %c0_i32_0 = arith.constant 0 : i32
    %c0_i32_1 = arith.constant 0 : i32
    return %arg1, %c0_i32, %c0_i32_0 : i32, i32, i32
  }
  func.func @transform_3(%arg0: i32, %arg1: i32, %arg2: i32) -> (i32, i32, i32, i32) {
    %c0_i32 = arith.constant 0 : i32
    %c0_i32_0 = arith.constant 0 : i32
    %c0_i32_1 = arith.constant 0 : i32
    return %arg0, %c0_i32, %arg2, %c0_i32_0 : i32, i32, i32, i32
  }
  func.func @transform_4(%arg0: i32, %arg1: i32, %arg2: i32) -> (i32, i32, i32, i32) {
    %c0_i32 = arith.constant 0 : i32
    %c0_i32_0 = arith.constant 0 : i32
    return %arg0, %arg1, %arg2, %c0_i32 : i32, i32, i32, i32
  }
  func.func @transform_5(%arg0: i32, %arg1: i32, %arg2: i32) -> (i32, i32, i32, i32) {
    %c0_i32 = arith.constant 0 : i32
    %c0_i32_0 = arith.constant 0 : i32
    return %arg0, %arg1, %arg2, %c0_i32 : i32, i32, i32, i32
  }
}

</mosaic_0001>

<bundles_post_ra>
// kernel: tpu_custom_call.1
= control target key start
LH: loop header
LB: loop body
LE: loop exit
PB: predicated region body
PF: predicated region fallthrough
CT: control target
= control target key end

     0   :  { %s3577_s0 = inlined_call_operand.hbm [shape: bf16[2,128,256], index: 0, kind: input, shape index: {}]   ;;  %s3578_s1 = inlined_call_operand.hbm [shape: bf16[256,768], index: 1, kind: input, shape index: {}]   ;;  %s3579_s2 = inlined_call_operand.vmem [shape: f32[2,1,384], index: 2, kind: input, shape index: {}]   ;;  %s3580_s3 = inlined_call_operand.hbm [shape: s8[2,1,128,128], index: 3, kind: input, shape index: {}]   ;;  %s3581_s4 = inlined_call_operand.hbm [shape: f32[2,2,128,128], index: 4, kind: output, shape index: {0}]   ;;  %s3582_s5 = inlined_call_operand.hbm [shape: bf16[2,2,128,128], index: 5, kind: output, shape index: {1}]  }
   0x1   :  { %3597 = sst [smem:[#allocation28_spill]] %s3577_s0 }
   0x2   :  { %3598 = sst [smem:[#allocation29_spill]] %s3578_s1 }
   0x3   :  { %3599 = sst [smem:[#allocation30_spill]] %s3581_s4 }
   0x4   :  { %11 = vsyncpa [#allocation4], 0 }
   0x5   :  { %13 = vsyncpa [#allocation4 + $0x1], 0 }
   0x6   :  { %14 = vsyncpa [#allocation7], 0 }
   0x7   :  { %16 = vsyncpa [#allocation7 + $0x1], 0 }
   0x8   :  { %17 = vsyncpa [#allocation5], 0 }
   0x9   :  { %19 = vsyncpa [#allocation5 + $0x1], 0 }
   0xa   :  { %20 = vsyncpa [#allocation11], 0 }
   0xb   :  { %22 = vsyncpa [#allocation11 + $0x1], 0  ;;  %s2818_s18 = smov 0   ;;  %s2820_s19 = smov 0  }
   0xc   :  { %s2822_s20 = smov 0   ;;  %s2824_s21 = smov 0  }
   0xd   :  { %s2826_s22 = smov 0   ;;  %s2828_s23 = smov 0  }
   0xe   :  { %s2830_s24 = smov 0   ;;  %s2832_s25 = smov 0  }
   0xf   :  { %s2834_s26 = smov 0   ;;  %s2836_s27 = smov 0  }
  0x10   :  { %s2838_s28 = smov 0   ;;  %s2840_s29 = smov 0  }
  0x11   :  { %s2842_s30 = smov 0   ;;  %s2844_s6 = smov 0  }
  0x12 LB: > { %3600 = sst [smem:[#allocation17_spill]] %s2720_s18  ;;  %s43_s7 = sadd.s32 1, %s2764_s29  ;;  %s2772_s6 = sphi %s2844_s6, %s28_s6   ;;  %s2768_s30 = sphi %s2842_s30, %s3652_s30   ;;  %s2764_s29 = sphi %s2840_s29, %s3651_s29   ;;  %s2760_s28 = sphi %s2838_s28, %s3650_s28   ;;  %s2756_s27 = sphi %s2836_s27, %s3641_s27   ;;  %s2752_s26 = sphi %s2834_s26, %s3640_s26   ;;  %s2748_s25 = sphi %s2832_s25, %s3649_s25   ;;  %s2744_s24 = sphi %s2830_s24, %s3648_s24   ;;  %s2740_s23 = sphi %s2828_s23, %s3638_s23   ;;  %s2736_s22 = sphi %s2826_s22, %s3647_s22   ;;  %s2732_s21 = sphi %s2824_s21, %s3646_s21   ;;  %s2728_s20 = sphi %s2822_s20, %s3636_s20   ;;  %s2724_s19 = sphi %s2820_s19, %s3645_s19   ;;  %s2720_s18 = sphi %s2818_s18, %s3644_s18  }
  0x13   : > { %3601 = sst [smem:[#allocation18_spill]] %s2728_s20  ;;  %p3588_p0 = scmp.eq.s32.totalorder %s2772_s6, 0 }
  0x14   : > { %3602 = sst [smem:[#allocation19_spill]] %s2740_s23  ;;  %p2890_p1 = scmp.ge.s32.totalorder %s43_s7, 2 }
  0x15   : > { %3603 = sst [smem:[#allocation20_spill]] %s2752_s26  ;;  %s80_s9 = sadd.s32 1, %s2740_s23 }
  0x16   : > { %3604 = sst [smem:[#allocation21_spill]] %s2764_s29  ;;  %p87_p2 = scmp.ne.s32.totalorder %s2740_s23, %s2736_s22 }
  0x17   : > { %s3654_s7 = smov (%p2890_p1, %s43_s7), 0  ;;  %p3587_p5 = scmp.lt.s32.totalorder %s2772_s6, 4 }
  0x18   : > { %3606 = sst [smem:[#allocation22_spill]] %s3654_s7  ;;  %p89_p4 = por %p87_p2, %p3588_p0 }
  0x19   : > { %s2907_s10 = ssub.s32 %s2764_s29, %s3654_s7  ;;  %s252_s11 = sand.u32 1, %s2772_s6  }
  0x1a   : > { %p78_p6 = scmp.eq.s32.totalorder %s2907_s10, 0  ;;  %s254_s12 = sand.u32 1, %s2740_s23  }
  0x1b   : > { %s2191_s14 = smul.u32 384, %s254_s12  ;;  %p2918_p7 = pnand %p3587_p5, %p89_p4 }
  0x1c   : > { %s2914_s13 = scalar_select %p78_p6, %s2740_s23, %s80_s9  }
  0x1d   : > { %s1950_s16 = smul.u32 192, %s2764_s29  ;;  %s3609_s1 = sld [smem:[#allocation29_spill]] }
  0x1e   : > { %3607 = sst [smem:[#allocation23_spill]] %s2914_s13  ;;  %s256_s9 = scalar_lea.vmem [#allocation6], %s2191_s14 }
  0x1f   : > { %s263_s13 = sshll.u32 %s256_s9, 4  ;;  %s2931_s12 = scalar_lea.sflag [#allocation7], %s252_s11  ;;  %s2928_s13 = int_to_ptr.vmem [resolvable:$true] %s263_s13 }
  0x20   : > { %p2498_p10 = pneg %p2918_p7 }
  0x23   : > { %s2926_s7 = scalar_lea.hbm %s3609_s1, %s1950_s16  ;;  %s2501_s17 = scalar_lea.hbm %s3609_s1, 12288 }
  0x24   : > { %s2496_s23 = scalar_lea.hbm %s2926_s7, 6144  ;;  %p2502_p13 = scmp.lt.u32.totalorder %s2926_s7, %s3609_s1 }
  0x25   : > { %p2497_p9 = scmp.ne.s32.totalorder %s2926_s7, %s2496_s23  ;;  %p2503_p2 = scmp.lt.u32.totalorder %s2501_s17, %s2496_s23 }
  0x26   : > { %p2505_p6 = scmp.lt.u32.totalorder %s2496_s23, %s2926_s7 }
  0x27   : > { %p2499_p11 = pnand %p2498_p10, %p2497_p9  ;;  %p2504_p4 = por %p2503_p2, %p2502_p13 }
  0x29   : > { %p2500_p12 = pneg %p2499_p11  ;;  %p2506_p5 = por %p2505_p6, %p2504_p4 }
  0x2b   : > { %p2507_p3 = pnand %p2506_p5, %p2500_p12 }
  0x2d   : > { %2510 = shalt.err (!%p2507_p3)
}
  0x2e   : > { %s2511_s11 = scalar_lea.vmem %s2928_s13, 6144  ;;  %s2774_s9 = smov [#allocation6]  }
  0x2f   : > { %p2512_p9 = scmp.ne.s32.totalorder %s2928_s13, %s2511_s11  ;;  %s2516_s4 = sshll.u32 %s2774_s9, 4  ;;  %s2517_s4 = int_to_ptr.vmem [resolvable:$false] %s2516_s4 }
  0x30   : > { %s2518_s29 = scalar_lea.vmem %s2517_s4, 12288  ;;  %p2519_p8 = scmp.lt.s32.totalorder %s2928_s13, %s2517_s4 }
  0x31   : > { %p2514_p11 = pnand %p2512_p9, %p2498_p10  ;;  %p2520_p13 = scmp.lt.s32.totalorder %s2518_s29, %s2511_s11 }
  0x33   : > { %p2515_p0 = pneg %p2514_p11  ;;  %p2521_p2 = por %p2520_p13, %p2519_p8 }
  0x35   : > { %p2522_p4 = pnand %p2521_p2, %p2515_p0 }
  0x37   : > { %2525 = shalt.err (!%p2522_p4)
}
  0x38   : > { %s2775_s23 = smov 384   ;;  %s2776_s16 = smov 192  }
  0x39   : > { %s2777_s17 = smov 12   ;;  %p301_p0 = scmp.lt.s32.totalorder %s2772_s6, 5 }
  0x3a   : > { %2210 = dma.hbm_to_vmem [thread:$0]  (!%p2918_p7), %s2926_s7, 6144, %s2928_s13, %s2931_s12, %s2775_s23, %s2776_s16, %s2777_s17  }
  0x3b   : > { %p3610_p3 = scmp.ge.s32.totalorder %s2772_s6, 1  ;;  %s2967_s11 = sadd.s32 4294967295, %s2772_s6  }
  0x3c   : > { %s1844_s9 = sadd.s32 4294967294, %s2772_s6   ;;  %s47_s4 = sadd.s32 1, %s2768_s30 }
  0x3d   : > { %p2962_p5 = pnand %p3610_p3, %p301_p0  ;;  %s54_s29 = sadd.s32 1, %s2752_s26 }
  0x3e   : > { %s3656_s4 = smov (!%p2890_p1, %s47_s4), %s2768_s30  ;;  %p61_p7 = scmp.ne.s32.totalorder %s2752_s26, %s2748_s25 }
  0x3f   : > { %p67_p8 = scmp.ne.s32.totalorder %s2748_s25, %s2744_s24  ;;  %p49_p10 = scmp.ge.s32.totalorder %s3656_s4, 2 }
  0x40   : > { %p68_p12 = scmp.eq.s32.totalorder %s2967_s11, 0  ;;  %p3612_p6 = scmp.eq.s32.totalorder %s2772_s6, 0 }
  0x41   : > { %s164_s13 = sadd.s32 1, %s2728_s20  ;;  %s3658_s4 = smov (%p49_p10, %s3656_s4), 0 }
  0x42   : > { %p2982_p9 = por %p3612_p6, %p61_p7  ;;  %3614 = sst [smem:[#allocation24_spill]] %s3658_s4 }
  0x43   : > { %p2989_p11 = por %p68_p12, %p67_p8  ;;  %p3616_p1 = scmp.ne.s32.totalorder %s2736_s22, %s2732_s21 }
  0x44   : > { %s51_s15 = ssub.s32 %s2768_s30, %s3658_s4  ;;  %p174_p2 = scmp.ne.s32.totalorder %s2728_s20, %s2724_s19 }
  0x45   : > { %s3615_s8 = scalar_select %p2989_p11, 1, 0 }
  0x46   : > { %p2996_p13 = por %p3616_p1, %p68_p12  ;;  %p52_p4 = scmp.eq.s32.totalorder %s51_s15, 0 }
  0x47   : > { %s159_s23 = sor.u32 %s2907_s10, %s51_s15  ;;  %p175_p3 = scmp.eq.s32.totalorder %s2967_s11, 3 }
  0x48   : > { %s3617_s24 = scalar_select %p2996_p13, 1, 0 }
  0x49   : > { %p162_p0 = scmp.eq.s32.totalorder %s159_s23, 0  ;;  %p3012_p7 = por %p175_p3, %p174_p2 }
  0x4a   : > { %s3007_s16 = scalar_select %p52_p4, %s2752_s26, %s54_s29  }
  0x4b   : > { %s3010_s17 = scalar_select %p162_p0, %s2728_s20, %s164_s13  }
  0x4c   : > { %3618 = sst [smem:[#allocation25_spill]] %s3007_s16  ;;  %p180_p8 = scmp.ne.s32.totalorder %s2724_s19, %s2720_s18 }
  0x4d   : > { %3619 = sst [smem:[#allocation26_spill]] %s3010_s17  ;;  %p181_p10 = scmp.eq.s32.totalorder %s1844_s9, 3 }
  0x4e   : > { %s3620_s1 = scalar_select %p3012_p7, 1, 0 }
  0x4f   : > { %s3019_s21 = sand.u32 1, %s2752_s26   ;;  %p3022_p12 = por %p181_p10, %p180_p8 }
  0x50   : > { %s1847_s10 = sshll.u32 %s3019_s21, 7  ;;  %s1949_s29 = sshll.u32 %s2768_s30, 11 }
  0x51   : > { %s3621_s15 = scalar_select %p3022_p12, 1, 0 }
  0x52   : > { %s235_s23 = scalar_lea.vmem [#allocation3], %s1847_s10  ;;  %s3623_s0 = sld [smem:[#allocation28_spill]] }
  0x53   : > { %3622 = sst [smem:[#allocation27_spill]] %s3621_s15  ;;  %s242_s13 = sshll.u32 %s235_s23, 4  ;;  %s3032_s13 = int_to_ptr.vmem [resolvable:$true] %s242_s13 }
  0x54   : > { %p3624_p6 = scmp.lt.s32.totalorder %s2772_s6, 4  ;;  %s232_s23 = scalar_lea.sflag [#allocation4], %s3019_s21 }
  0x56   : > { %p3038_p1 = pnand %p3624_p6, %p2982_p9 }
  0x58   : > { %s3030_s17 = scalar_lea.hbm %s3623_s0, %s1949_s29  ;;  %p2528_p4 = pneg %p3038_p1 }
  0x59   : > { %s2526_s26 = scalar_lea.hbm %s3030_s17, 2048  ;;  %s2531_s7 = scalar_lea.hbm %s3623_s0, 4096 }
  0x5a   : > { %p2527_p2 = scmp.ne.s32.totalorder %s3030_s17, %s2526_s26  ;;  %p2532_p9 = scmp.lt.u32.totalorder %s3030_s17, %s3623_s0 }
  0x5b   : > { %p2533_p8 = scmp.lt.u32.totalorder %s2531_s7, %s2526_s26  ;;  %p2535_p6 = scmp.lt.u32.totalorder %s2526_s26, %s3030_s17 }
  0x5c   : > { %p2529_p0 = pnand %p2528_p4, %p2527_p2 }
  0x5d   : > { %p2534_p10 = por %p2533_p8, %p2532_p9 }
  0x5e   : > { %p2530_p3 = pneg %p2529_p0 }
  0x5f   : > { %p2536_p12 = por %p2535_p6, %p2534_p10 }
  0x61   : > { %p2537_p7 = pnand %p2536_p12, %p2530_p3 }
  0x63   : > { %2540 = shalt.err (!%p2537_p7)
}
  0x64   : > { %s2541_s10 = scalar_lea.vmem %s3032_s13, 2048  ;;  %s2778_s4 = smov [#allocation3]  }
  0x65   : > { %p2542_p2 = scmp.ne.s32.totalorder %s3032_s13, %s2541_s10  ;;  %s2546_s16 = sshll.u32 %s2778_s4, 4  ;;  %s2547_s16 = int_to_ptr.vmem [resolvable:$false] %s2546_s16 }
  0x66   : > { %s2548_s20 = scalar_lea.vmem %s2547_s16, 4096  ;;  %p2549_p11 = scmp.lt.s32.totalorder %s3032_s13, %s2547_s16 }
  0x67   : > { %p2544_p0 = pnand %p2542_p2, %p2528_p4  ;;  %p2550_p9 = scmp.lt.s32.totalorder %s2548_s20, %s2541_s10 }
  0x69   : > { %p2545_p13 = pneg %p2544_p0  ;;  %p2551_p8 = por %p2550_p9, %p2549_p11 }
  0x6b   : > { %p2552_p10 = pnand %p2551_p8, %p2545_p13 }
  0x6d   : > { %2555 = shalt.err (!%p2552_p10)
}
  0x6e   : > { %s2779_s26 = smov 128   ;;  %s2780_s7 = smov 8  }
  0x6f   : > { %2207 = dma.hbm_to_vmem [thread:$0]  (!%p3038_p1), %s3030_s17, 2048, %s3032_s13, %s232_s23, %s2779_s26, %s2779_s26, %s2780_s7  }
  0x70   : > { %s1951_s29 = sshll.u32 %s2768_s30, 9  ;;  %s3626_s10 = sshll.u32 %s3019_s21, 5 }
  0x71   : > { %s284_s4 = scalar_lea.vmem [#allocation8], %s3626_s10  ;;  %s3080_s15 = scalar_lea.hbm %s3580_s3, %s1951_s29 }
  0x72   : > { %s293_s16 = sshll.u32 %s284_s4, 4  ;;  %s2556_s18 = scalar_lea.hbm %s3080_s15, 512  ;;  %s3082_s16 = int_to_ptr.vmem [resolvable:$true] %s293_s16 }
  0x73   : > { %p2557_p11 = scmp.ne.s32.totalorder %s3080_s15, %s2556_s18  ;;  %s2561_s13 = scalar_lea.hbm %s3580_s3, 1024 }
  0x74   : > { %p2562_p12 = scmp.lt.u32.totalorder %s3080_s15, %s3580_s3  ;;  %p2563_p3 = scmp.lt.u32.totalorder %s2561_s13, %s2556_s18 }
  0x75   : > { %p2559_p13 = pnand %p2557_p11, %p2528_p4  ;;  %p2565_p2 = scmp.lt.u32.totalorder %s2556_s18, %s3080_s15 }
  0x76   : > { %p2564_p6 = por %p2563_p3, %p2562_p12 }
  0x77   : > { %p2560_p7 = pneg %p2559_p13 }
  0x78   : > { %p2566_p0 = por %p2565_p2, %p2564_p6 }
  0x7a   : > { %p2567_p9 = pnand %p2566_p0, %p2560_p7 }
  0x7c   : > { %2570 = shalt.err (!%p2567_p9)
}
  0x7d   : > { %s2571_s29 = scalar_lea.vmem %s3082_s16, 512  ;;  %s2781_s10 = smov [#allocation8]  }
  0x7e   : > { %p2572_p8 = scmp.ne.s32.totalorder %s3082_s16, %s2571_s29  ;;  %s2576_s4 = sshll.u32 %s2781_s10, 4  ;;  %s2577_s4 = int_to_ptr.vmem [resolvable:$false] %s2576_s4 }
  0x7f   : > { %s2578_s20 = scalar_lea.vmem %s2577_s4, 1024  ;;  %p2579_p13 = scmp.lt.s32.totalorder %s3082_s16, %s2577_s4 }
  0x80   : > { %p2574_p10 = pnand %p2572_p8, %p2528_p4  ;;  %p2580_p12 = scmp.lt.s32.totalorder %s2578_s20, %s2571_s29 }
  0x82   : > { %p2575_p11 = pneg %p2574_p10  ;;  %p2581_p3 = por %p2580_p12, %p2579_p13 }
  0x84   : > { %p2582_p6 = pnand %p2581_p3, %p2575_p11 }
  0x86   : > { %2585 = shalt.err (!%p2582_p6)
}
  0x87   : > { %2213 = dma.hbm_to_vmem [thread:$0]  (!%p3038_p1), %s3080_s15, 512, %s3082_s16, %s2931_s12, %s2779_s26, %s2779_s26, %s2780_s7  }
  0x88   : > { %305 = sbr.rel (%p2962_p5) target bundleno = 1142 (0x476), region = 36  ;;  %s307_s18 = sand.u32 (!%p2962_p5), 1, %s2748_s25  }
  0x89   : > { %s1855_s17 = sshll.u32 (!%p2962_p5), %s307_s18, 7  ;;  %s308_s21 = scalar_lea.sflag (!%p2962_p5), [#allocation4], %s307_s18 }
  0x8a   : > { %s3114_s13 = scalar_lea.vmem (!%p2962_p5), [#allocation3], %s1855_s17  ;;  %p3627_p4 = scmp.ne.s32.totalorder (!%p2962_p5), %s3615_s8, 0 }
  0x8f   : > { %2699 = dma.done.wait (%p3627_p4), %s308_s21, 2048  }
  0x90   : > { %2701 = vsyncadd (%p3627_p4), %s308_s21, 4294965248  ;;  %s316_s9 = sand.u32 1, %s2967_s11   ;;  %s318_s12 = sand.u32 1, %s2736_s22  }
  0x91   : > { %s2192_s15 = smul.u32 384, %s318_s12  ;;  %s317_s14 = scalar_lea.sflag [#allocation7], %s316_s9 }
  0x92   : > { %p3628_p5 = scmp.ne.s32.totalorder %s3617_s24, 0 }
  0x93   : > { %s3122_s26 = scalar_lea.vmem [#allocation6], %s2192_s15 }
  0x94   : > { %2703 = dma.done.wait (%p3628_p5), %s317_s14, 6144  }
  0x95   : > { %2705 = vsyncadd (%p3628_p5), %s317_s14, 4294961152  ;;  %s1856_s7 = sshll.u32 %s307_s18, 5 }
  0x96   : > { %s3128_s16 = scalar_lea.vmem [#allocation8], %s1856_s7 }
  0x97   : > { %2707 = dma.done.wait (%p3627_p4), %s317_s14, 512  }
  0x98   : > { %2709 = vsyncadd (%p3627_p4), %s317_s14, 4294966784  ;;  %v2344_v0 = vld [vmem:[%s3122_s26 + $0x4] ss:$12 sps:$4 sm:$0xff]   ;;  %v2346_v1 = vld [vmem:[%s3122_s26] ss:$12 sps:$4 sm:$0xff]   ;;  %p376_p1 = scmp.lt.s32.totalorder %s2756_s27, 1 }
  0x99   : > { %821 = vmatprep.subr.bf16.mxu0 %v2344_v0  ;;  %v2347_v2 = vld [vmem:[%s3122_s26 + $0x1c] ss:$12 sps:$4 sm:$0xff]   ;;  %v2349_v3 = vld [vmem:[%s3122_s26 + $0x18] ss:$12 sps:$4 sm:$0xff]   ;;  %v2350_v4 = vld [vmem:[%s3122_s26 + $0x34] ss:$12 sps:$4 sm:$0xff]   ;;  %v470_v0 = vlaneseq }
  0x9a   : > { %822 = vmatpush1.bf16.msra.mxu0 %v2346_v1  ;;  %v2352_v5 = vld [vmem:[%s3122_s26 + $0x30] ss:$12 sps:$4 sm:$0xff]   ;;  %v2353_v6 = vld [vmem:[%s3122_s26 + $0x4c] ss:$12 sps:$4 sm:$0xff]   ;;  %v2355_v7 = vld [vmem:[%s3122_s26 + $0x48] ss:$12 sps:$4 sm:$0xff]  }
  0x9b   : > { %823 = vmatprep.subr.bf16.mxu0 %v2347_v2  ;;  %v2356_v8 = vld [vmem:[%s3122_s26 + $0x64] ss:$12 sps:$4 sm:$0xff]   ;;  %v2358_v9 = vld [vmem:[%s3122_s26 + $0x60] ss:$12 sps:$4 sm:$0xff]   ;;  %v2359_v10 = vld [vmem:[%s3122_s26 + $0x7c] ss:$12 sps:$4 sm:$0xff]  }
  0x9c   : > { %v2361_v11 = vld [vmem:[%s3122_s26 + $0x78] ss:$12 sps:$4 sm:$0xff]   ;;  %v2362_v12 = vld [vmem:[%s3122_s26 + $0x94] ss:$12 sps:$4 sm:$0xff]   ;;  %v2364_v14 = vld [vmem:[%s3122_s26 + $0x90] ss:$12 sps:$4 sm:$0xff]  }
  0x9d   : > { %v2394_v13 = vld [vmem:[%s3114_s13 + $0x4] ss:$8 sps:$4 sm:$0xff]   ;;  %v2367_v16 = vld [vmem:[%s3122_s26 + $0xa8] ss:$12 sps:$4 sm:$0xff]   ;;  %v2376_v27 = vld [vmem:[%s3122_s26 + $0xf0] ss:$12 sps:$4 sm:$0xff]  }
  0x9e   : > { %824 = vmatpush1.bf16.msra.mxu0 %v2349_v3  ;;  %v2365_v15 = vld [vmem:[%s3122_s26 + $0xac] ss:$12 sps:$4 sm:$0xff]   ;;  %853 = vmatprep.mubr.bf16.mxu0 %v2394_v13  ;;  %v2368_v17 = vld [vmem:[%s3122_s26 + $0xc4] ss:$12 sps:$4 sm:$0xff]   ;;  %v2371_v19 = vld [vmem:[%s3122_s26 + $0xdc] ss:$12 sps:$4 sm:$0xff]  }
  0x9f   : > { %825 = vmatprep.subr.bf16.mxu0 %v2350_v4  ;;  %966 = vmatprep.mubr.bf16.mxu1 %v2394_v13  ;;  %v2370_v18 = vld [vmem:[%s3122_s26 + $0xc0] ss:$12 sps:$4 sm:$0xff]   ;;  %v2416_v20 = vld [vmem:[%s3122_s26 + $0xc8] ss:$12 sps:$4 sm:$0xff]   ;;  %v2373_v21 = vld [vmem:[%s3122_s26 + $0xd8] ss:$12 sps:$4 sm:$0xff]  }
  0xa0   : > { %v2417_v22 = vld [vmem:[%s3122_s26 + $0x8] ss:$12 sps:$4 sm:$0xff]   ;;  %2015 = vmatprep.subr.bf16.mxu1 %v2416_v20  ;;  %v2418_v24 = vld [vmem:[%s3122_s26 + $0xe0] ss:$12 sps:$4 sm:$0xff]   ;;  %v2420_v26 = vld [vmem:[%s3122_s26 + $0xf8] ss:$12 sps:$4 sm:$0xff]  }
  0xa1   : > { %v2374_v23 = vld [vmem:[%s3122_s26 + $0xf4] ss:$12 sps:$4 sm:$0xff]   ;;  %2016 = vmatpush3.bf16.msra.mxu1 %v2417_v22  ;;  %v2377_v28 = vld [vmem:[%s3122_s26 + $0x10c] ss:$12 sps:$4 sm:$0xff]   ;;  %v2422_v30 = vld [vmem:[%s3122_s26 + $0x110] ss:$12 sps:$4 sm:$0xff]  }
  0xa2   : > { %826 = vmatpush1.bf16.msra.mxu0 %v2352_v5  ;;  %v2419_v25 = vld [vmem:[%s3122_s26 + $0x20] ss:$12 sps:$4 sm:$0xff]   ;;  %2017 = vmatprep.subr.bf16.mxu1 %v2418_v24  ;;  %v2421_v29 = vld [vmem:[%s3122_s26 + $0x38] ss:$12 sps:$4 sm:$0xff]   ;;  %v2379_v31 = vld [vmem:[%s3122_s26 + $0x108] ss:$12 sps:$4 sm:$0xff]  }
  0xa3   : > { %827 = vmatprep.subr.bf16.mxu0 %v2353_v6  ;;  %v2380_v32 = vld [vmem:[%s3122_s26 + $0x124] ss:$12 sps:$4 sm:$0xff]   ;;  %v2424_v34 = vld [vmem:[%s3122_s26 + $0x128] ss:$12 sps:$4 sm:$0xff]   ;;  %v2382_v35 = vld [vmem:[%s3122_s26 + $0x120] ss:$12 sps:$4 sm:$0xff]  }
  0xa4   : > { %v2423_v33 = vld [vmem:[%s3122_s26 + $0x50] ss:$12 sps:$4 sm:$0xff]   ;;  %v2425_v36 = vld [vmem:[%s3122_s26 + $0x68] ss:$12 sps:$4 sm:$0xff]   ;;  %v2426_v38 = vld [vmem:[%s3122_s26 + $0x140] ss:$12 sps:$4 sm:$0xff]  }
  0xa5   : > { %2018 = vmatpush3.bf16.msra.mxu1 %v2419_v25  ;;  %v2383_v37 = vld [vmem:[%s3122_s26 + $0x13c] ss:$12 sps:$4 sm:$0xff]   ;;  %v2385_v39 = vld [vmem:[%s3122_s26 + $0x138] ss:$12 sps:$4 sm:$0xff]   ;;  %v2427_v40 = vld [vmem:[%s3122_s26 + $0x80] ss:$12 sps:$4 sm:$0xff]  }
  0xa6   : > { %828 = vmatpush1.bf16.msra.mxu0 %v2355_v7  ;;  %2019 = vmatprep.subr.bf16.mxu1 %v2420_v26  ;;  %v2386_v41 = vld [vmem:[%s3122_s26 + $0x154] ss:$12 sps:$4 sm:$0xff]   ;;  %v2428_v42 = vld [vmem:[%s3122_s26 + $0x158] ss:$12 sps:$4 sm:$0xff]   ;;  %v2388_v43 = vld [vmem:[%s3122_s26 + $0x150] ss:$12 sps:$4 sm:$0xff]  }
  0xa7   : > { %829 = vmatprep.subr.bf16.mxu0 %v2356_v8  ;;  %v2429_v44 = vld [vmem:[%s3122_s26 + $0x98] ss:$12 sps:$4 sm:$0xff]   ;;  %v2430_v46 = vld [vmem:[%s3122_s26 + $0x170] ss:$12 sps:$4 sm:$0xff]   ;;  %v2391_v47 = vld [vmem:[%s3122_s26 + $0x168] ss:$12 sps:$4 sm:$0xff]  }
  0xa8   : > { %v2389_v45 = vld [vmem:[%s3122_s26 + $0x16c] ss:$12 sps:$4 sm:$0xff]   ;;  %v2431_v48 = vld [vmem:[%s3122_s26 + $0xb0] ss:$12 sps:$4 sm:$0xff]   ;;  %v2392_v49 = vld [vmem:[%s3114_s13] ss:$8 sps:$4 sm:$0xff]  }
  0xa9   : > { %2020 = vmatpush3.bf16.msra.mxu1 %v2421_v29  ;;  %v2395_v50 = vld [vmem:[%s3114_s13 + $0x14] ss:$8 sps:$4 sm:$0xff]   ;;  %v2397_v51 = vld [vmem:[%s3114_s13 + $0x10] ss:$8 sps:$4 sm:$0xff]   ;;  %v2398_v52 = vld [vmem:[%s3114_s13 + $0x24] ss:$8 sps:$4 sm:$0xff]  }
  0xaa   : > { %830 = vmatpush1.bf16.msra.mxu0 %v2358_v9  ;;  %2021 = vmatprep.subr.bf16.mxu1 %v2422_v30  ;;  %v2400_v53 = vld [vmem:[%s3114_s13 + $0x20] ss:$8 sps:$4 sm:$0xff]   ;;  %v2401_v54 = vld [vmem:[%s3114_s13 + $0x34] ss:$8 sps:$4 sm:$0xff]   ;;  %v2403_v55 = vld [vmem:[%s3114_s13 + $0x30] ss:$8 sps:$4 sm:$0xff]  }
  0xab   : > { %831 = vmatprep.subr.bf16.mxu0 %v2359_v10  ;;  %v2404_v56 = vld [vmem:[%s3114_s13 + $0x44] ss:$8 sps:$4 sm:$0xff]   ;;  %v2406_v57 = vld [vmem:[%s3114_s13 + $0x40] ss:$8 sps:$4 sm:$0xff]   ;;  %v2407_v58 = vld [vmem:[%s3114_s13 + $0x54] ss:$8 sps:$4 sm:$0xff]  }
  0xac   : > { %v2409_v59 = vld [vmem:[%s3114_s13 + $0x50] ss:$8 sps:$4 sm:$0xff]   ;;  %v2410_v60 = vld [vmem:[%s3114_s13 + $0x64] ss:$8 sps:$4 sm:$0xff]   ;;  %v2412_v61 = vld [vmem:[%s3114_s13 + $0x60] ss:$8 sps:$4 sm:$0xff]  }
  0xad   : > { %2022 = vmatpush3.bf16.msra.mxu1 %v2423_v33  ;;  %v2413_v62 = vld [vmem:[%s3114_s13 + $0x74] ss:$8 sps:$4 sm:$0xff]   ;;  %v2415_v63 = vld [vmem:[%s3114_s13 + $0x70] ss:$8 sps:$4 sm:$0xff]   ;;  %s377_s11 = scalar_select %p376_p1, %s2756_s27, 1  ;;  %v471_v1 = vshrl.u32 %v470_v0, 7 }
  0xae   : > { %832 = vmatpush1.bf16.msra.mxu0 %v2361_v11  ;;  %2023 = vmatprep.subr.bf16.mxu1 %v2424_v34  ;;  %s3341_s29 = sand.u32 1, %s2724_s19   ;;  %s1941_s20 = sshll.u32 %s2756_s27, 4 }
  0xaf   : > { %833 = vmatprep.subr.bf16.mxu0 %v2362_v12  ;;  %s2193_s8 = smul.u32 3, %s377_s11  ;;  %v472_v2 = vsub.s32 0, %v471_v1  ;;  %v476_v4 = vsub.s32 1, %v471_v1  ;;  %v480_v5 = vsub.s32 2, %v471_v1  ;;  %s1858_s10 = sshll.u32 %s3341_s29, 6 }
  0xb0   : > { %s3359_s4 = scalar_lea.vmem [#allocation10], %s1858_s10  ;;  %s1942_s18 = sshll.u32 %s2760_s28, 5 }
  0xb1   : > { %2024 = vmatpush3.bf16.msra.mxu1 %v2425_v36  ;;  %s379_s0 = scalar_lea.vmem %s3579_s2, %s2193_s8  ;;  %s3438_s17 = sadd.s32 %s1942_s18, %s1941_s20 }
  0xb2   : > { %834 = vmatpush1.bf16.msra.mxu0 %v2364_v14  ;;  %2025 = vmatprep.subr.bf16.mxu1 %v2426_v38  ;;  %v468_v3 = vld [vmem:[%s379_s0] sm:$0x7]  ;;  %s1946_s21 = sshll.u32 %s3438_s17, 6  ;;  %s1656_s13 = sshll.u32 %s3359_s4, 4  ;;  %s3447_s13 = int_to_ptr.vmem [resolvable:$true] %s1656_s13 }
  0xb3   : > { %835 = vmatprep.subr.bf16.mxu0 %v2365_v15  ;;  %v3203_v6 = vrot.slane %v468_v3, %v472_v2  ;;  %v3205_v8 = vrot.slane %v468_v3, %v476_v4  ;;  %v3207_v10 = vrot.slane %v468_v3, %v480_v5  ;;  %s3445_s15 = scalar_lea.hbm %s3582_s5, %s1946_s21  ;;  %s1619_s14 = scalar_lea.sflag [#allocation11], %s3341_s29 }
  0xb4   : > { %s2586_s26 = scalar_lea.vmem %s3447_s13, 1024  ;;  %p3629_p2 = scmp.ne.s32.totalorder %s3620_s1, 0 }
  0xb5   : > { %2026 = vmatpush3.bf16.msra.mxu1 %v2427_v40  ;;  %p2587_p7 = scmp.ne.s32.totalorder %s3447_s13, %s2586_s26  ;;  %s2782_s27 = smov [#allocation10]  }
  0xb6   : > { %836 = vmatpush1.bf16.msra.mxu0 %v2367_v16  ;;  %2027 = vmatprep.subr.bf16.mxu1 %v2428_v42  ;;  %s2590_s28 = sshll.u32 %s2782_s27, 4  ;;  %s2591_s28 = int_to_ptr.vmem [resolvable:$false] %s2590_s28 }
  0xb7   : > { %837 = vmatprep.subr.bf16.mxu0 %v2368_v17  ;;  %p2588_p0 = pnand %p2587_p7, %p3629_p2  ;;  %s2592_s7 = scalar_lea.vmem %s2591_s28, 2048 }
  0xb8   : > { %p2593_p8 = scmp.lt.s32.totalorder %s3447_s13, %s2591_s28  ;;  %p2594_p10 = scmp.lt.s32.totalorder %s2592_s7, %s2586_s26 }
  0xb9   : > { %2028 = vmatpush3.bf16.msra.mxu1 %v2429_v44  ;;  %p2589_p9 = pneg %p2588_p0 }
  0xba   : > { %838 = vmatpush1.bf16.msra.mxu0 %v2370_v18  ;;  %2029 = vmatprep.subr.bf16.mxu1 %v2430_v46  ;;  %p2595_p11 = por %p2594_p10, %p2593_p8 }
  0xbb   : > { %839 = vmatprep.subr.bf16.mxu0 %v2371_v19 }
  0xbc   : > { %p2596_p13 = pnand %p2595_p11, %p2589_p9 }
  0xbd   : > { %2030 = vmatpush3.bf16.msra.mxu1 %v2431_v48 }
  0xbe   : > { %840 = vmatpush1.bf16.msra.mxu0 %v2373_v21 }
  0xbf   : > { %841 = vmatprep.subr.bf16.mxu0 %v2374_v23 }
  0xc0   : > { %967 = vmatmul.mubr.bf16.vlgmr.msra.gmra.mrb[0].mxu1 %v2392_v49 }
  0xc1   : > { %974 = vmatprep.mubr.bf16.mxu1 %v2395_v50 }
  0xc2   : > { %842 = vmatpush1.bf16.msra.mxu0 %v2376_v27 }
  0xc3   : > { %843 = vmatprep.subr.bf16.mxu0 %v2377_v28 }
  0xc6   : > { %844 = vmatpush1.bf16.msra.mxu0 %v2379_v31 }
  0xc7   : > { %845 = vmatprep.subr.bf16.mxu0 %v2380_v32 }
  0xc8   : > { %975 = vmatmul.mubr.bf16.gmra.mrb[4].mxu1 %v2397_v51 }
  0xc9   : > { %982 = vmatprep.mubr.bf16.mxu1 %v2398_v52 }
  0xca   : > { %846 = vmatpush1.bf16.msra.mxu0 %v2382_v35 }
  0xcb   : > { %847 = vmatprep.subr.bf16.mxu0 %v2383_v37 }
  0xce   : > { %848 = vmatpush1.bf16.msra.mxu0 %v2385_v39 }
  0xcf   : > { %849 = vmatprep.subr.bf16.mxu0 %v2386_v41 }
  0xd0   : > { %983 = vmatmul.mubr.bf16.gmra.mrb[8].mxu1 %v2400_v53 }
  0xd1   : > { %990 = vmatprep.mubr.bf16.mxu1 %v2401_v54 }
  0xd2   : > { %850 = vmatpush1.bf16.msra.mxu0 %v2388_v43 }
  0xd3   : > { %851 = vmatprep.subr.bf16.mxu0 %v2389_v45 }
  0xd6   : > { %852 = vmatpush1.bf16.msra.mxu0 %v2391_v47 }
  0xd8   : > { %991 = vmatmul.mubr.bf16.gmra.mrb[12].mxu1 %v2403_v55 }
  0xd9   : > { %854 = vmatmul.mubr.bf16.vlgmr.msra.gmra.mrb[0].mxu0 %v2392_v49  ;;  %998 = vmatprep.mubr.bf16.mxu1 %v2404_v56 }
  0xda   : > { %863 = vmatprep.mubr.bf16.mxu0 %v2395_v50 }
  0xe0   : > { %999 = vmatmul.mubr.bf16.gmra.mrb[16].mxu1 %v2406_v57 }
  0xe1   : > { %864 = vmatmul.mubr.bf16.gmra.mrb[4].mxu0 %v2397_v51  ;;  %1006 = vmatprep.mubr.bf16.mxu1 %v2407_v58 }
  0xe2   : > { %873 = vmatprep.mubr.bf16.mxu0 %v2398_v52 }
  0xe8   : > { %1007 = vmatmul.mubr.bf16.gmra.mrb[20].mxu1 %v2409_v59 }
  0xe9   : > { %874 = vmatmul.mubr.bf16.gmra.mrb[8].mxu0 %v2400_v53  ;;  %1014 = vmatprep.mubr.bf16.mxu1 %v2410_v60 }
  0xea   : > { %883 = vmatprep.mubr.bf16.mxu0 %v2401_v54 }
  0xf0   : > { %1015 = vmatmul.mubr.bf16.gmra.mrb[24].mxu1 %v2412_v61 }
  0xf1   : > { %884 = vmatmul.mubr.bf16.gmra.mrb[12].mxu0 %v2403_v55  ;;  %1022 = vmatprep.mubr.bf16.mxu1 %v2413_v62 }
  0xf2   : > { %893 = vmatprep.mubr.bf16.mxu0 %v2404_v56 }
  0xf8   : > { %1023 = vmatmul.mubr.bf16.gmra.mrb[28].mxu1 %v2415_v63 }
  0xf9   : > { %894 = vmatmul.mubr.bf16.gmra.mrb[16].mxu0 %v2406_v57 }
  0xfa   : > { %903 = vmatprep.mubr.bf16.mxu0 %v2407_v58 }
 0x101   : > { %904 = vmatmul.mubr.bf16.gmra.mrb[20].mxu0 %v2409_v59 }
 0x102   : > { %913 = vmatprep.mubr.bf16.mxu0 %v2410_v60 }
 0x109   : > { %914 = vmatmul.mubr.bf16.gmra.mrb[24].mxu0 %v2412_v61 }
 0x10a   : > { %923 = vmatprep.mubr.bf16.mxu0 %v2413_v62 }
 0x111   : > { %924 = vmatmul.mubr.bf16.gmra.mrb[28].mxu0 %v2415_v63 }
 0x193   : > { %v2031_v9 = vpop.f32.mrb[0].mxu1 }
 0x194   : > { %v2032_v13 = vpop.f32.mrb[1].mxu1 }
 0x195   : > { %v2033_v15 = vadd.f32 %v2032_v13, %v2031_v9  ;;  %v2034_v16 = vpop.f32.mrb[2].mxu1 }
 0x196   : > { %v2035_v19 = vpop.f32.mrb[3].mxu1 }
 0x197   : > { %v969_v22 = vadd.f32 %v2033_v15, %v3207_v10  ;;  %v2036_v23 = vadd.f32 %v2035_v19, %v2034_v16 }
 0x199   : > { %v972_v27 = vadd.f32 %v2036_v23, %v3207_v10 }
 0x19b   : > { %v3215_v30 = vpack.c.bf16 %v972_v27, %v969_v22  ;;  %v2037_v31 = vpop.f32.mrb[4].mxu1 }
 0x19c   : > { %v2038_v34 = vpop.f32.mrb[5].mxu1 }
 0x19d   : > { %v2039_v36 = vadd.f32 %v2038_v34, %v2037_v31  ;;  %v2040_v37 = vpop.f32.mrb[6].mxu1  ;;  %2143 = vmatprep.subr.bf16.mxu0 %v3215_v30 }
 0x19e   : > { %v2041_v40 = vpop.f32.mrb[7].mxu1  ;;  %2144 = vmatpush3.bf16.msra.mxu0 %v3215_v30 }
 0x19f   : > { %v977_v43 = vadd.f32 %v2039_v36, %v3207_v10  ;;  %v2042_v44 = vadd.f32 %v2041_v40, %v2040_v37 }
 0x1a1   : > { %v980_v48 = vadd.f32 %v2042_v44, %v3207_v10 }
 0x1a3   : > { %v3231_v51 = vpack.c.bf16 %v980_v48, %v977_v43  ;;  %v2043_v52 = vpop.f32.mrb[8].mxu1 }
 0x1a4   : > { %v2044_v55 = vpop.f32.mrb[9].mxu1 }
 0x1a5   : > { %v2045_v57 = vadd.f32 %v2044_v55, %v2043_v52  ;;  %v2046_v58 = vpop.f32.mrb[10].mxu1  ;;  %2145 = vmatprep.subr.bf16.mxu0 %v3231_v51 }
 0x1a6   : > { %v2047_v61 = vpop.f32.mrb[11].mxu1  ;;  %2146 = vmatpush3.bf16.msra.mxu0 %v3231_v51 }
 0x1a7   : > { %v985_v0 = vadd.f32 %v2045_v57, %v3207_v10  ;;  %v2048_v1 = vadd.f32 %v2047_v61, %v2046_v58 }
 0x1a9   : > { %v988_v5 = vadd.f32 %v2048_v1, %v3207_v10 }
 0x1ac   : > { %v855_v7 = vpop.f32.mrb[0].mxu0 }
 0x1ad   : > { %v856_v11 = vadd.f32 %v855_v7, %v3203_v6  ;;  %v857_v12 = vpop.f32.mrb[1].mxu0 }
 0x1ae   : > { %v859_v14 = vpop.f32.mrb[2].mxu0  ;;  %v858_v20 = vadd.f32 %v857_v12, %v3205_v8  ;;  %v2049_v12 = vpop.f32.mrb[12].mxu1 }
 0x1af   : > { %v860_v17 = vadd.f32 %v859_v14, %v3203_v6  ;;  %v861_v18 = vpop.f32.mrb[3].mxu0  ;;  %v1031_v24 = vmul.f32 0.088388346, %v856_v11  ;;  %v3247_v11 = vpack.c.bf16 %v988_v5, %v985_v0  ;;  %v2050_v15 = vpop.f32.mrb[13].mxu1 }
 0x1b0   : > { %v862_v21 = vadd.f32 %v861_v18, %v3205_v8  ;;  %v2052_v18 = vpop.f32.mrb[14].mxu1 }
 0x1b1   : > { %v1032_v25 = vmul.f32 0.088388346, %v860_v17  ;;  %v2051_v17 = vadd.f32 %v2050_v15, %v2049_v12  ;;  %2147 = vmatprep.subr.bf16.mxu0 %v3247_v11 }
 0x1b2   : > { %v1063_v26 = vpack.c.bf16 %v862_v21, %v858_v20  ;;  %v2053_v21 = vpop.f32.mrb[15].mxu1  ;;  %2148 = vmatpush3.bf16.msra.mxu0 %v3247_v11 }
 0x1b3   : > { %v1047_v28 = vpack.c.bf16 %v1032_v25, %v1031_v24  ;;  %v993_v24 = vadd.f32 %v2051_v17, %v3207_v10  ;;  %v2054_v25 = vadd.f32 %v2053_v21, %v2052_v18  ;;  %v2055_v34 = vpop.f32.mrb[16].mxu1 }
 0x1b4   : > { %v865_v29 = vpop.f32.mrb[4].mxu0  ;;  %2111 = vmatprep.subr.bf16.mxu1 %v1063_v26  ;;  %v2056_v37 = vpop.f32.mrb[17].mxu1 }
 0x1b5   : > { %v866_v32 = vadd.f32 %v865_v29, %v3203_v6  ;;  %v867_v33 = vpop.f32.mrb[5].mxu0  ;;  %2112 = vmatpush3.bf16.xpose.msra.mxu1 %v1063_v26  ;;  %2127 = vmatprep.mubr.bf16.mxu1 %v1047_v28  ;;  %v996_v29 = vadd.f32 %v2054_v25, %v3207_v10  ;;  %v2058_v40 = vpop.f32.mrb[18].mxu1 }
 0x1b6   : > { %v869_v35 = vpop.f32.mrb[6].mxu0  ;;  %v868_v41 = vadd.f32 %v867_v33, %v3205_v8  ;;  %v2059_v43 = vpop.f32.mrb[19].mxu1 }
 0x1b7   : > { %v870_v38 = vadd.f32 %v869_v35, %v3203_v6  ;;  %v871_v39 = vpop.f32.mrb[7].mxu0  ;;  %v3224_v45 = vmul.f32 0.088388346, %v866_v32  ;;  %v3263_v33 = vpack.c.bf16 %v996_v29, %v993_v24 }
 0x1b8   : > { %v872_v42 = vadd.f32 %v871_v39, %v3205_v8  ;;  %v2057_v39 = vadd.f32 %v2056_v37, %v2055_v34 }
 0x1b9   : > { %v3226_v46 = vmul.f32 0.088388346, %v870_v38  ;;  %2149 = vmatprep.subr.bf16.mxu0 %v3263_v33 }
 0x1ba   : > { %v1065_v47 = vpack.c.bf16 %v872_v42, %v868_v41  ;;  %2150 = vmatpush3.bf16.msra.mxu0 %v3263_v33  ;;  %v1001_v48 = vadd.f32 %v2057_v39, %v3207_v10 }
 0x1bb   : > { %v1048_v49 = vpack.c.bf16 %v3226_v46, %v3224_v45 }
 0x1bc   : > { %v875_v50 = vpop.f32.mrb[8].mxu0  ;;  %2113 = vmatprep.subr.bf16.mxu1 %v1065_v47 }
 0x1bd   : > { %v876_v53 = vadd.f32 %v875_v50, %v3203_v6  ;;  %v877_v54 = vpop.f32.mrb[9].mxu0  ;;  %2114 = vmatpush3.bf16.xpose.msra.mxu1 %v1065_v47  ;;  %v2060_v50 = vadd.f32 %v2059_v43, %v2058_v40 }
 0x1be   : > { %v879_v56 = vpop.f32.mrb[10].mxu0  ;;  %v878_v62 = vadd.f32 %v877_v54, %v3205_v8 }
 0x1bf   : > { %v880_v59 = vadd.f32 %v879_v56, %v3203_v6  ;;  %v881_v60 = vpop.f32.mrb[11].mxu0  ;;  %v3240_v2 = vmul.f32 0.088388346, %v876_v53  ;;  %v1004_v55 = vadd.f32 %v2060_v50, %v3207_v10 }
 0x1c0   : > { %v882_v63 = vadd.f32 %v881_v60, %v3205_v8 }
 0x1c1   : > { %v3242_v3 = vmul.f32 0.088388346, %v880_v59  ;;  %v3279_v58 = vpack.c.bf16 %v1004_v55, %v1001_v48  ;;  %v2061_v59 = vpop.f32.mrb[20].mxu1 }
 0x1c2   : > { %v1067_v4 = vpack.c.bf16 %v882_v63, %v878_v62  ;;  %v2062_v62 = vpop.f32.mrb[21].mxu1 }
 0x1c3   : > { %v1049_v7 = vpack.c.bf16 %v3242_v3, %v3240_v2  ;;  %v2063_v0 = vadd.f32 %v2062_v62, %v2061_v59  ;;  %v2064_v1 = vpop.f32.mrb[22].mxu1  ;;  %2151 = vmatprep.subr.bf16.mxu0 %v3279_v58  ;;  %v1120_v3 = vld [vmem:[%s3128_s16 + $0x8] sm:$0xff] }
 0x1c4   : > { %v885_v9 = vpop.f32.mrb[12].mxu0  ;;  %2115 = vmatprep.subr.bf16.mxu1 %v1067_v4  ;;  %2152 = vmatpush3.bf16.msra.mxu0 %v3279_v58 }
 0x1c5   : > { %v886_v13 = vadd.f32 %v885_v9, %v3203_v6  ;;  %v887_v14 = vpop.f32.mrb[13].mxu0  ;;  %2116 = vmatpush3.bf16.xpose.msra.mxu1 %v1067_v4  ;;  %v2065_v9 = vpop.f32.mrb[23].mxu1 }
 0x1c6   : > { %v889_v16 = vpop.f32.mrb[14].mxu0  ;;  %v888_v22 = vadd.f32 %v887_v14, %v3205_v8  ;;  %v1009_v14 = vadd.f32 %v2063_v0, %v3207_v10  ;;  %v2066_v15 = vadd.f32 %v2065_v9, %v2064_v1 }
 0x1c7   : > { %v890_v19 = vadd.f32 %v889_v16, %v3203_v6  ;;  %v891_v20 = vpop.f32.mrb[15].mxu0  ;;  %v3256_v26 = vmul.f32 0.088388346, %v886_v13 }
 0x1c8   : > { %v892_v23 = vadd.f32 %v891_v20, %v3205_v8 }
 0x1c9   : > { %v3258_v27 = vmul.f32 0.088388346, %v890_v19  ;;  %v1012_v19 = vadd.f32 %v2066_v15, %v3207_v10 }
 0x1ca   : > { %v1069_v28 = vpack.c.bf16 %v892_v23, %v888_v22  ;;  %v2067_v23 = vpop.f32.mrb[24].mxu1 }
 0x1cb   : > { %v1050_v31 = vpack.c.bf16 %v3258_v27, %v3256_v26  ;;  %v3295_v22 = vpack.c.bf16 %v1012_v19, %v1009_v14  ;;  %v1129_v26 = vunpack.c.2.s8 %v1120_v3  ;;  %v1130_v27 = vunpack.c.3.s8 %v1120_v3 }
 0x1cc   : > { %v895_v32 = vpop.f32.mrb[16].mxu0  ;;  %2117 = vmatprep.subr.bf16.mxu1 %v1069_v28 }
 0x1cd   : > { %v896_v35 = vadd.f32 %v895_v32, %v3203_v6  ;;  %v897_v36 = vpop.f32.mrb[17].mxu0  ;;  %2118 = vmatpush3.bf16.xpose.msra.mxu1 %v1069_v28  ;;  %v2068_v28 = vpop.f32.mrb[25].mxu1  ;;  %2153 = vmatprep.subr.bf16.mxu0 %v3295_v22 }
 0x1ce   : > { %v899_v38 = vpop.f32.mrb[18].mxu0  ;;  %v898_v44 = vadd.f32 %v897_v36, %v3205_v8  ;;  %v2069_v32 = vadd.f32 %v2068_v28, %v2067_v23  ;;  %v2070_v34 = vpop.f32.mrb[26].mxu1  ;;  %2154 = vmatpush3.bf16.msra.mxu0 %v3295_v22  ;;  %v1121_v28 = vld [vmem:[%s3128_s16 + $0x10] sm:$0xff] }
 0x1cf   : > { %v900_v41 = vadd.f32 %v899_v38, %v3203_v6  ;;  %v901_v42 = vpop.f32.mrb[19].mxu0  ;;  %v3272_v52 = vmul.f32 0.088388346, %v896_v35  ;;  %v2071_v37 = vpop.f32.mrb[27].mxu1 }
 0x1d0   : > { %v902_v47 = vadd.f32 %v901_v42, %v3205_v8  ;;  %v1017_v40 = vadd.f32 %v2069_v32, %v3207_v10  ;;  %v2073_v55 = vpop.f32.mrb[28].mxu1 }
 0x1d1   : > { %v3274_v53 = vmul.f32 0.088388346, %v900_v41  ;;  %v2072_v41 = vadd.f32 %v2071_v37, %v2070_v34 }
 0x1d2   : > { %v1071_v54 = vpack.c.bf16 %v902_v47, %v898_v44 }
 0x1d3   : > { %v1051_v56 = vpack.c.bf16 %v3274_v53, %v3272_v52  ;;  %v1020_v47 = vadd.f32 %v2072_v41, %v3207_v10  ;;  %v1127_v53 = vunpack.c.0.s8 %v1120_v3  ;;  %v1133_v41 = vunpack.c.2.s8 %v1121_v28 }
 0x1d4   : > { %v905_v57 = vpop.f32.mrb[20].mxu0  ;;  %2119 = vmatprep.subr.bf16.mxu1 %v1071_v54 }
 0x1d5   : > { %v906_v60 = vadd.f32 %v905_v57, %v3203_v6  ;;  %v907_v61 = vpop.f32.mrb[21].mxu0  ;;  %2120 = vmatpush3.bf16.xpose.msra.mxu1 %v1071_v54  ;;  %v1076_v54 = vpack.c.bf16 %v1020_v47, %v1017_v40  ;;  %v1143_v34 = vcvt.s32.f32 %v1127_v53 }
 0x1d6   : > { %v909_v63 = vpop.f32.mrb[22].mxu0  ;;  %v908_v12 = vadd.f32 %v907_v61, %v3205_v8 }
 0x1d7   : > { %v910_v4 = vadd.f32 %v909_v63, %v3203_v6  ;;  %v911_v5 = vpop.f32.mrb[23].mxu0  ;;  %v3288_v16 = vmul.f32 0.088388346, %v906_v60  ;;  %v2074_v60 = vpop.f32.mrb[29].mxu1  ;;  %2155 = vmatprep.subr.bf16.mxu0 %v1076_v54 }
 0x1d8   : > { %v912_v13 = vadd.f32 %v911_v5, %v3205_v8  ;;  %v2075_v62 = vadd.f32 %v2074_v60, %v2073_v55  ;;  %v2076_v63 = vpop.f32.mrb[30].mxu1  ;;  %2156 = vmatpush3.bf16.msra.mxu0 %v1076_v54 }
 0x1d9   : > { %v3290_v17 = vmul.f32 0.088388346, %v910_v4  ;;  %v2077_v4 = vpop.f32.mrb[31].mxu1 }
 0x1da   : > { %v1073_v18 = vpack.c.bf16 %v912_v13, %v908_v12  ;;  %v1025_v12 = vadd.f32 %v2075_v62, %v3207_v10  ;;  %v2078_v13 = vadd.f32 %v2077_v4, %v2076_v63  ;;  %v1122_v63 = vld [vmem:[%s3128_s16 + $0x18] sm:$0xff] }
 0x1db   : > { %v1052_v20 = vpack.c.bf16 %v3290_v17, %v3288_v16 }
 0x1dc   : > { %v915_v21 = vpop.f32.mrb[24].mxu0  ;;  %2121 = vmatprep.subr.bf16.mxu1 %v1073_v18  ;;  %v1028_v19 = vadd.f32 %v2078_v13, %v3207_v10  ;;  %v1135_v13 = vunpack.c.0.s8 %v1122_v63 }
 0x1dd   : > { %v916_v24 = vadd.f32 %v915_v21, %v3203_v6  ;;  %v917_v25 = vpop.f32.mrb[25].mxu0  ;;  %2122 = vmatpush3.bf16.xpose.msra.mxu1 %v1073_v18 }
 0x1de   : > { %v919_v29 = vpop.f32.mrb[26].mxu0  ;;  %v918_v38 = vadd.f32 %v917_v25, %v3205_v8  ;;  %v1078_v23 = vpack.c.bf16 %v1028_v19, %v1025_v12  ;;  %v1146_v25 = vcvt.s32.f32 %v1130_v27  ;;  %v1138_v19 = vunpack.c.3.s8 %v1122_v63 }
 0x1df   : > { %v920_v35 = vadd.f32 %v919_v29, %v3203_v6  ;;  %v921_v36 = vpop.f32.mrb[27].mxu0  ;;  %v1043_v42 = vmul.f32 0.088388346, %v916_v24  ;;  %v1145_v24 = vcvt.s32.f32 %v1129_v26 }
 0x1e0   : > { %v922_v39 = vadd.f32 %v921_v36, %v3205_v8  ;;  %2157 = vmatprep.subr.bf16.mxu0 %v1078_v23  ;;  %v1162_v40 = vmul.f32 -9999.0, %v1146_v25 }
 0x1e1   : > { %v1044_v43 = vmul.f32 0.088388346, %v920_v35  ;;  %2158 = vmatpush3.bf16.msra.mxu0 %v1078_v23 }
 0x1e2   : > { %v1075_v44 = vpack.c.bf16 %v922_v39, %v918_v38  ;;  %v1131_v38 = vunpack.c.0.s8 %v1121_v28  ;;  %v1161_v39 = vmul.f32 -9999.0, %v1145_v24 }
 0x1e3   : > { %v1053_v48 = vpack.c.bf16 %v1044_v43, %v1043_v42  ;;  %v1134_v42 = vunpack.c.3.s8 %v1121_v28 }
 0x1e4   : > { %v925_v50 = vpop.f32.mrb[28].mxu0  ;;  %2123 = vmatprep.subr.bf16.mxu1 %v1075_v44  ;;  %v1147_v55 = vcvt.s32.f32 %v1131_v38 }
 0x1e5   : > { %v926_v57 = vadd.f32 %v925_v50, %v3203_v6  ;;  %v927_v59 = vpop.f32.mrb[29].mxu0  ;;  %2124 = vmatpush3.bf16.xpose.msra.mxu1 %v1075_v44  ;;  %v1159_v44 = vmul.f32 -9999.0, %v1143_v34  ;;  %v1150_v62 = vcvt.s32.f32 %v1134_v42 }
 0x1e6   : > { %v929_v61 = vpop.f32.mrb[30].mxu0  ;;  %v928_v5 = vadd.f32 %v927_v59, %v3205_v8  ;;  %v1163_v12 = vmul.f32 -9999.0, %v1147_v55 }
 0x1e7   : > { %v930_v0 = vadd.f32 %v929_v61, %v3203_v6  ;;  %v931_v1 = vpop.f32.mrb[31].mxu0  ;;  %v1045_v14 = vmul.f32 0.088388346, %v926_v57  ;;  %v1119_v6 = vld [vmem:[%s3128_s16] sm:$0xff]  ;;  %v1149_v61 = vcvt.s32.f32 %v1133_v41 }
 0x1e8   : > { %v932_v9 = vadd.f32 %v931_v1, %v3205_v8  ;;  %v1125_v8 = vunpack.c.2.s8 %v1119_v6  ;;  %v1126_v10 = vunpack.c.3.s8 %v1119_v6  ;;  %v1124_v45 = vunpack.c.1.s8 %v1119_v6 }
 0x1e9   : > { %v1046_v15 = vmul.f32 0.088388346, %v930_v0 }
 0x1ea   : > { %v1077_v18 = vpack.c.bf16 %v932_v9, %v928_v5  ;;  %v1141_v46 = vcvt.s32.f32 %v1125_v8  ;;  %v1140_v2 = vcvt.s32.f32 %v1124_v45  ;;  %v1151_v45 = vcvt.s32.f32 %v1135_v13 }
 0x1eb   : > { %v1054_v21 = vpack.c.bf16 %v1046_v15, %v1045_v14  ;;  %v1165_v14 = vmul.f32 -9999.0, %v1149_v61  ;;  %v1166_v15 = vmul.f32 -9999.0, %v1150_v62 }
 0x1ec   : > { %2125 = vmatprep.subr.bf16.mxu1 %v1077_v18  ;;  %v1156_v52 = vmul.f32 -9999.0, %v1140_v2 }
 0x1ed   : > { %2126 = vmatpush3.bf16.xpose.msra.mxu1 %v1077_v18  ;;  %v1137_v18 = vunpack.c.2.s8 %v1122_v63 }
 0x1ee   : > { %2175 = vmatprep.subr.bf16.mxu1 %v3215_v30 }
 0x1ef   : > { %v1153_v2 = vcvt.s32.f32 %v1137_v18 }
 0x1f4   : > { %2128 = vmatmul.mubr.bf16.vlgmr.msra.gmra.mrb[32].mxu1 %v1048_v49  ;;  %v1142_v49 = vcvt.s32.f32 %v1126_v10 }
 0x1f5   : > { %2131 = vmatprep.mubr.bf16.mxu1 %v1049_v7  ;;  %2183 = vmatpush3.bf16.msra.mxu1 %v3215_v30  ;;  %v1123_v30 = vunpack.c.0.s8 %v1119_v6  ;;  %v1157_v7 = vmul.f32 -9999.0, %v1141_v46  ;;  %v1136_v6 = vunpack.c.1.s8 %v1122_v63 }
 0x1f6   : > { %2176 = vmatprep.subr.bf16.mxu1 %v3231_v51 }
 0x1f9   : > { %2184 = vmatpush3.bf16.msra.mxu1 %v3231_v51  ;;  %v1139_v51 = vcvt.s32.f32 %v1123_v30 }
 0x1fa   : > { %2177 = vmatprep.subr.bf16.mxu1 %v3247_v11 }
 0x1fc   : > { %2132 = vmatmul.mubr.bf16.gmra.mrb[36].mxu1 %v1050_v31 }
 0x1fd   : > { %2135 = vmatprep.mubr.bf16.mxu1 %v1051_v56  ;;  %2185 = vmatpush3.bf16.msra.mxu1 %v3247_v11  ;;  %v1158_v11 = vmul.f32 -9999.0, %v1142_v49  ;;  %v1128_v56 = vunpack.c.1.s8 %v1120_v3  ;;  %v1154_v3 = vcvt.s32.f32 %v1138_v19 }
 0x1fe   : > { %2178 = vmatprep.subr.bf16.mxu1 %v3263_v33 }
 0x1ff   : > { %v1144_v35 = vcvt.s32.f32 %v1128_v56 }
 0x201   : > { %2186 = vmatpush3.bf16.msra.mxu1 %v3263_v33  ;;  %v1155_v33 = vmul.f32 -9999.0, %v1139_v51  ;;  %v1160_v47 = vmul.f32 -9999.0, %v1144_v35 }
 0x202   : > { %2179 = vmatprep.subr.bf16.mxu1 %v3279_v58 }
 0x204   : > { %2136 = vmatmul.mubr.bf16.gmra.mrb[40].mxu1 %v1052_v20 }
 0x205   : > { %2139 = vmatprep.mubr.bf16.mxu1 %v1053_v48  ;;  %2187 = vmatpush3.bf16.msra.mxu1 %v3279_v58  ;;  %v1132_v48 = vunpack.c.1.s8 %v1121_v28 }
 0x206   : > { %2180 = vmatprep.subr.bf16.mxu1 %v3295_v22 }
 0x207   : > { %v1148_v4 = vcvt.s32.f32 %v1132_v48 }
 0x209   : > { %2188 = vmatpush3.bf16.msra.mxu1 %v3295_v22 }
 0x20a   : > { %2181 = vmatprep.subr.bf16.mxu1 %v1076_v54 }
 0x20c   : > { %2140 = vmatmul.mubr.bf16.gmra.mrb[44].mxu1 %v1054_v21 }
 0x20d   : > { %2189 = vmatpush3.bf16.msra.mxu1 %v1076_v54 }
 0x20e   : > { %2182 = vmatprep.subr.bf16.mxu1 %v1078_v23 }
 0x211   : > { %2190 = vmatpush3.bf16.msra.mxu1 %v1078_v23  ;;  %v1164_v23 = vmul.f32 -9999.0, %v1148_v4 }
 0x2c7   : > { %v2129_v31 = vpop.f32.mrb[32].mxu1 }
 0x2c8   : > { %v3343_v58 = vadd.f32 %v2129_v31, %v1157_v7  ;;  %v1205_v16 = vpop.f32.mrb[33].mxu1  ;;  %v1167_v31 = vmul.f32 -9999.0, %v1151_v45 }
 0x2c9   : > { %v2130_v17 = vpop.f32.mrb[34].mxu1  ;;  %v3350_v29 = vadd.f32 %v1205_v16, %v1155_v33  ;;  %v1169_v33 = vmul.f32 -9999.0, %v1153_v2 }
 0x2ca   : > { %v3346_v20 = vadd.f32 %v2130_v17, %v1158_v11  ;;  %1352 = vmax.xlane.f32.xlu0 %v3343_v58  ;;  %v1208_v22 = vpop.f32.mrb[35].mxu1  ;;  %v1152_v11 = vcvt.s32.f32 %v1136_v6 }
 0x2cb   : > { %v3352_v32 = vadd.f32 %v1208_v22, %v1156_v52  ;;  %v1170_v52 = vmul.f32 -9999.0, %v1154_v3 }
 0x2cc   : > { %v1976_v36 = vpack.c.bf16 %v3346_v20, %v3343_v58  ;;  %1354 = vmax.xlane.f32.xlu1 %v3346_v20  ;;  %v1168_v56 = vmul.f32 -9999.0, %v1152_v11 }
 0x2cd   : > { %v1971_v37 = vpack.c.bf16 %v3352_v32, %v3350_v29 }
 0x2ce   : > { %2008 = vst [vmem:[%s3359_s4 + $0x8] sm:$0xff] %v1976_v36   ;;  %1348 = vmax.xlane.f32.xlu0 %v3350_v29 }
 0x2cf   : > { %1972 = vst [vmem:[%s3359_s4] sm:$0xff] %v1971_v37   ;;  %v2133_v43 = vpop.f32.mrb[36].mxu1 }
 0x2d0   : > { %v1221_v50 = vpop.f32.mrb[37].mxu1  ;;  %v3364_v57 = vadd.f32 %v2133_v43, %v1161_v39 }
 0x2d1   : > { %v2134_v54 = vpop.f32.mrb[38].mxu1  ;;  %v3370_v0 = vadd.f32 %v1221_v50, %v1159_v44 }
 0x2d2   : > { %v3366_v59 = vadd.f32 %v2134_v54, %v1162_v40  ;;  %v1224_v60 = vpop.f32.mrb[39].mxu1  ;;  %1350 = vmax.xlane.f32.xlu0 %v3352_v32 }
 0x2d3   : > { %v3372_v1 = vadd.f32 %v1224_v60, %v1160_v47 }
 0x2d4   : > { %v1986_v5 = vpack.c.bf16 %v3366_v59, %v3364_v57 }
 0x2d5   : > { %v1981_v9 = vpack.c.bf16 %v3372_v1, %v3370_v0  ;;  %1358 = vmax.xlane.f32.xlu1 %v3372_v1 }
 0x2d6   : > { %2010 = vst [vmem:[%s3359_s4 + $0x18] sm:$0xff] %v1986_v5   ;;  %1360 = vmax.xlane.f32.xlu0 %v3364_v57 }
 0x2d7   : > { %2009 = vst [vmem:[%s3359_s4 + $0x10] sm:$0xff] %v1981_v9   ;;  %v2137_v21 = vpop.f32.mrb[40].mxu1 }
 0x2d8   : > { %v1237_v8 = vpop.f32.mrb[41].mxu1  ;;  %v3384_v46 = vadd.f32 %v2137_v21, %v1165_v14 }
 0x2d9   : > { %v3382_v10 = vadd.f32 %v1237_v8, %v1163_v12  ;;  %v2138_v30 = vpop.f32.mrb[42].mxu1 }
 0x2da   : > { %v3386_v49 = vadd.f32 %v2138_v30, %v1166_v15  ;;  %v1240_v51 = vpop.f32.mrb[43].mxu1  ;;  %1356 = vmax.xlane.f32.xlu0 %v3370_v0 }
 0x2db   : > { %v3389_v7 = vadd.f32 %v1240_v51, %v1164_v23  ;;  %1364 = vmax.xlane.f32.xlu1 %v3382_v10 }
 0x2dc   : > { %v1996_v26 = vpack.c.bf16 %v3386_v49, %v3384_v46 }
 0x2dd   : > { %v1991_v27 = vpack.c.bf16 %v3389_v7, %v3382_v10 }
 0x2de   : > { %2012 = vst [vmem:[%s3359_s4 + $0x28] sm:$0xff] %v1996_v26   ;;  %1368 = vmax.xlane.f32.xlu0 %v3384_v46 }
 0x2df   : > { %2011 = vst [vmem:[%s3359_s4 + $0x20] sm:$0xff] %v1991_v27   ;;  %v2141_v53 = vpop.f32.mrb[44].mxu1  ;;  %1370 = vmax.xlane.f32.xlu1 %v3386_v49 }
 0x2e0   : > { %v1253_v16 = vpop.f32.mrb[45].mxu1  ;;  %v3402_v24 = vadd.f32 %v2141_v53, %v1169_v33 }
 0x2e1   : > { %v3400_v17 = vadd.f32 %v1253_v16, %v1167_v31  ;;  %v2142_v22 = vpop.f32.mrb[46].mxu1 }
 0x2e2   : > { %v3404_v25 = vadd.f32 %v2142_v22, %v1170_v52  ;;  %v1256_v28 = vpop.f32.mrb[47].mxu1 }
 0x2e3   : > { %v3406_v34 = vadd.f32 %v1256_v28, %v1168_v56  ;;  %1366 = vmax.xlane.f32.xlu1 %v3389_v7  ;;  %1372 = vmax.xlane.f32.xlu0 %v3400_v17 }
 0x2e4   : > { %v2006_v35 = vpack.c.bf16 %v3404_v25, %v3402_v24 }
 0x2e5   : > { %v2001_v36 = vpack.c.bf16 %v3406_v34, %v3400_v17 }
 0x2e6   : > { %2014 = vst [vmem:[%s3359_s4 + $0x38] sm:$0xff] %v2006_v35  }
 0x2e7   : > { %2013 = vst [vmem:[%s3359_s4 + $0x30] sm:$0xff] %v2001_v36   ;;  %1362 = vmax.xlane.f32.xlu1 %v3366_v59  ;;  %1376 = vmax.xlane.f32.xlu0 %v3402_v24 }
 0x2eb   : > { %1374 = vmax.xlane.f32.xlu1 %v3406_v34 }
 0x2ef   : > { %1378 = vmax.xlane.f32.xlu1 %v3404_v25 }
 0x357   : > { %v1353_v37 = vpop.xlane.xlu0 %1352 }
 0x358   : > { %v1382_v38 = vsub.f32 %v3343_v58, %v1353_v37 }
 0x359   : > { %v1355_v39 = vpop.xlane.xlu1 %1354 }
 0x35a   : > { %v1400_v40 = vmul.f32 1.442695, %v1382_v38  ;;  %v1383_v41 = vsub.f32 %v3346_v20, %v1355_v39 }
 0x35b   : > { %v1349_v42 = vpop.xlane.xlu0 %1348 }
 0x35c   : > { %2432 = vpow2.f32 %v1400_v40  ;;  %v1402_v43 = vmul.f32 1.442695, %v1383_v41  ;;  %v1380_v44 = vsub.f32 %v3350_v29, %v1349_v42 }
 0x35e   : > { %2434 = vpow2.f32 %v1402_v43  ;;  %v1396_v47 = vmul.f32 1.442695, %v1380_v44 }
 0x35f   : > { %v1351_v48 = vpop.xlane.xlu0 %1350 }
 0x360   : > { %2436 = vpow2.f32 %v1396_v47  ;;  %v1381_v50 = vsub.f32 %v3352_v32, %v1351_v48 }
 0x362   : > { %v1398_v54 = vmul.f32 1.442695, %v1381_v50  ;;  %v1359_v55 = vpop.xlane.xlu1 %1358 }
 0x363   : > { %v1385_v60 = vsub.f32 %v3372_v1, %v1359_v55  ;;  %v1361_v58 = vpop.xlane.xlu0 %1360 }
 0x364   : > { %2438 = vpow2.f32 %v1398_v54  ;;  %v1386_v61 = vsub.f32 %v3364_v57, %v1361_v58 }
 0x365   : > { %v1406_v63 = vmul.f32 1.442695, %v1385_v60 }
 0x366   : > { %v2433_v20 = vpop.eup %2432  ;;  %v1408_v62 = vmul.f32 1.442695, %v1386_v61 }
 0x367   : > { %1432 = vadd.xlane.f32.xlu0 %v2433_v20  ;;  %v1357_v4 = vpop.xlane.xlu0 %1356 }
 0x368   : > { %v2435_v29 = vpop.eup %2434  ;;  %2440 = vpow2.f32 %v1408_v62  ;;  %v1384_v5 = vsub.f32 %v3370_v0, %v1357_v4  ;;  %v1365_v9 = vpop.xlane.xlu1 %1364 }
 0x369   : > { %1434 = vadd.xlane.f32.xlu1 %v2435_v29  ;;  %2442 = vpow2.f32 %v1406_v63  ;;  %v1388_v1 = vsub.f32 %v3382_v10, %v1365_v9  ;;  %v1461_v30 = vpack.c.bf16 %v2435_v29, %v2433_v20 }
 0x36a   : > { %v2437_v32 = vpop.eup %2436  ;;  %v1404_v12 = vmul.f32 1.442695, %v1384_v5 }
 0x36b   : > { %1428 = vadd.xlane.f32.xlu0 %v2437_v32  ;;  %v1369_v13 = vpop.xlane.xlu0 %1368  ;;  %v1412_v21 = vmul.f32 1.442695, %v1388_v1 }
 0x36c   : > { %2444 = vpow2.f32 %v1404_v12  ;;  %v1390_v57 = vsub.f32 %v3384_v46, %v1369_v13  ;;  %v1371_v14 = vpop.xlane.xlu1 %1370 }
 0x36d   : > { %v1391_v15 = vsub.f32 %v3386_v49, %v1371_v14 }
 0x36e   : > { %v2439_v18 = vpop.eup %2438  ;;  %v1416_v19 = vmul.f32 1.442695, %v1390_v57 }
 0x36f   : > { %1430 = vadd.xlane.f32.xlu1 %v2439_v18  ;;  %v1460_v0 = vpack.c.bf16 %v2439_v18, %v2437_v32  ;;  %v1418_v23 = vmul.f32 1.442695, %v1391_v15 }
 0x370   : > { %2446 = vpow2.f32 %v1416_v19  ;;  %v1367_v6 = vpop.xlane.xlu1 %1366  ;;  %v1373_v8 = vpop.xlane.xlu0 %1372 }
 0x371   : > { %v1389_v10 = vsub.f32 %v3389_v7, %v1367_v6  ;;  %v1392_v45 = vsub.f32 %v3400_v17, %v1373_v8  ;;  %2159 = vmatprep.mubr.bf16.mxu0 %v1460_v0  ;;  %2448 = vpow2.f32 %v1412_v21 }
 0x372   : > { %v2441_v51 = vpop.eup %2440  ;;  %2160 = vmatmul.mubr.bf16.vlgmr.msra.gmra.mrb[32].mxu0 %v1461_v30  ;;  %2450 = vpow2.f32 %v1418_v23 }
 0x373   : > { %v1414_v46 = vmul.f32 1.442695, %v1389_v10  ;;  %1440 = vadd.xlane.f32.xlu0 %v2441_v51  ;;  %v1420_v49 = vmul.f32 1.442695, %v1392_v45  ;;  %v2443_v11 = vpop.eup %2442 }
 0x374   : > { %v1363_v2 = vpop.xlane.xlu1 %1362  ;;  %v1377_v3 = vpop.xlane.xlu0 %1376 }
 0x375   : > { %2452 = vpow2.f32 %v1414_v46  ;;  %v1387_v26 = vsub.f32 %v3366_v59, %v1363_v2  ;;  %v1394_v27 = vsub.f32 %v3402_v24, %v1377_v3 }
 0x376   : > { %v2445_v31 = vpop.eup %2444  ;;  %2454 = vpow2.f32 %v1420_v49 }
 0x377   : > { %v1410_v7 = vmul.f32 1.442695, %v1387_v26  ;;  %1436 = vadd.xlane.f32.xlu0 %v2445_v31  ;;  %v1462_v33 = vpack.c.bf16 %v2443_v11, %v2445_v31  ;;  %v1424_v52 = vmul.f32 1.442695, %v1394_v27 }
 0x378   : > { %v1375_v53 = vpop.xlane.xlu1 %1374 }
 0x379   : > { %2456 = vpow2.f32 %v1410_v7  ;;  %v1393_v56 = vsub.f32 %v3406_v34, %v1375_v53  ;;  %2163 = vmatprep.mubr.bf16.mxu0 %v1462_v33 }
 0x37a   : > { %v2447_v16 = vpop.eup %2446  ;;  %2458 = vpow2.f32 %v1424_v52 }
 0x37b   : > { %v1422_v17 = vmul.f32 1.442695, %v1393_v56  ;;  %1448 = vadd.xlane.f32.xlu0 %v2447_v16  ;;  %v2449_v28 = vpop.eup %2448 }
 0x37c   : > { %v1379_v22 = vpop.xlane.xlu1 %1378  ;;  %v2451_v24 = vpop.eup %2450 }
 0x37d   : > { %2460 = vpow2.f32 %v1422_v17  ;;  %v1395_v59 = vsub.f32 %v3404_v25, %v1379_v22  ;;  %v1465_v38 = vpack.c.bf16 %v2451_v24, %v2447_v16 }
 0x37f   : > { %v2453_v35 = vpop.eup %2452  ;;  %v1426_v36 = vmul.f32 1.442695, %v1395_v59  ;;  %1444 = vadd.xlane.f32.xlu0 %v2449_v28 }
 0x380   : > { %v1464_v37 = vpack.c.bf16 %v2453_v35, %v2449_v28  ;;  %v2455_v39 = vpop.eup %2454 }
 0x381   : > { %2462 = vpow2.f32 %v1426_v36 }
 0x382   : > { %2167 = vmatprep.mubr.bf16.mxu1 %v1464_v37 }
 0x383   : > { %v2457_v34 = vpop.eup %2456  ;;  %2168 = vmatmul.mubr.bf16.vlgmr.msra.gmra.mrb[48].mxu1 %v1465_v38  ;;  %1452 = vadd.xlane.f32.xlu0 %v2455_v39 }
 0x384   : > { %1442 = vadd.xlane.f32.xlu1 %v2457_v34  ;;  %v1463_v40 = vpack.c.bf16 %v2457_v34, %v2441_v51  ;;  %v2459_v41 = vpop.eup %2458 }
 0x386   : > { %2164 = vmatmul.mubr.bf16.gmra.mrb[36].mxu0 %v1463_v40 }
 0x387   : > { %v2461_v42 = vpop.eup %2460  ;;  %1456 = vadd.xlane.f32.xlu0 %v2459_v41 }
 0x388   : > { %1438 = vadd.xlane.f32.xlu1 %v2443_v11  ;;  %v1466_v25 = vpack.c.bf16 %v2461_v42, %v2455_v39 }
 0x38a   : > { %2171 = vmatprep.mubr.bf16.mxu1 %v1466_v25 }
 0x38b   : > { %v2463_v43 = vpop.eup %2462 }
 0x38c   : > { %1450 = vadd.xlane.f32.xlu1 %v2451_v24  ;;  %v1467_v44 = vpack.c.bf16 %v2463_v43, %v2459_v41 }
 0x38e   : > { %2172 = vmatmul.mubr.bf16.gmra.mrb[52].mxu1 %v1467_v44 }
 0x390   : > { %1446 = vadd.xlane.f32.xlu1 %v2453_v35 }
 0x394   : > { %1454 = vadd.xlane.f32.xlu1 %v2461_v42 }
 0x398   : > { %1458 = vadd.xlane.f32.xlu1 %v2463_v43 }
 0x399   : > { %2599 = shalt.err (!%p2596_p13)
}
 0x39a   : > { %s2600_s16 = scalar_lea.hbm %s3445_s15, 1024  ;;  %s2604_s24 = scalar_lea.hbm %s3582_s5, 4096 }
 0x39b   : > { %p2601_p12 = scmp.ne.s32.totalorder %s3445_s15, %s2600_s16  ;;  %p2605_p4 = scmp.lt.u32.totalorder %s3445_s15, %s3582_s5 }
 0x39c   : > { %p2606_p5 = scmp.lt.u32.totalorder %s2604_s24, %s2600_s16  ;;  %p2608_p7 = scmp.lt.u32.totalorder %s2600_s16, %s3445_s15 }
 0x39d   : > { %p2602_p3 = pnand %p2601_p12, %p3629_p2 }
 0x39e   : > { %p2607_p1 = por %p2606_p5, %p2605_p4 }
 0x39f   : > { %p2603_p6 = pneg %p2602_p3 }
 0x3a0   : > { %p2609_p0 = por %p2608_p7, %p2607_p1 }
 0x3a2   : > { %p2610_p9 = pnand %p2609_p0, %p2603_p6 }
 0x3a4   : > { %2613 = shalt.err (!%p2610_p9)
}
 0x3a5   : > { %s2783_s10 = smov 64   ;;  %s2784_s4 = smov 4  }
 0x3a6   : > { %2201 = dma.vmem_to_hbm [thread:$0]  (%p3629_p2), %s3447_s13, 1024, %s3445_s15, %s1619_s14, %s2783_s10, %s2783_s10, %s2784_s4  }
 0x3a7   : > { %s1857_s20 = sshll.u32 %s3341_s29, 7  ;;  %s1943_s21 = sshll.u32 %s3438_s17, 7 }
 0x3a8   : > { %s3474_s18 = scalar_lea.vmem [#allocation9], %s1857_s20  ;;  %s3630_s15 = sld [smem:[#allocation30_spill]] }
 0x3a9   : > { %s1636_s13 = sshll.u32 %s3474_s18, 4  ;;  %s1614_s17 = scalar_lea.sflag [#allocation5], %s3341_s29  ;;  %s3496_s13 = int_to_ptr.vmem [resolvable:$true] %s1636_s13 }
 0x3aa   : > { %s2614_s26 = scalar_lea.vmem %s3496_s13, 2048  ;;  %s2785_s27 = smov [#allocation9]  }
 0x3ab   : > { %p2615_p8 = scmp.ne.s32.totalorder %s3496_s13, %s2614_s26  ;;  %s2618_s28 = sshll.u32 %s2785_s27, 4  ;;  %s2619_s28 = int_to_ptr.vmem [resolvable:$false] %s2618_s28 }
 0x3ac   : > { %s2620_s7 = scalar_lea.vmem %s2619_s28, 4096  ;;  %p2621_p13 = scmp.lt.s32.totalorder %s3496_s13, %s2619_s28 }
 0x3ad   : > { %p2616_p10 = pnand %p2615_p8, %p3629_p2  ;;  %p2622_p12 = scmp.lt.s32.totalorder %s2620_s7, %s2614_s26 }
 0x3ae   : > { %s3494_s14 = scalar_lea.hbm %s3630_s15, %s1943_s21 }
 0x3af   : > { %p2617_p11 = pneg %p2616_p10  ;;  %p2623_p3 = por %p2622_p12, %p2621_p13 }
 0x3b1   : > { %p2624_p6 = pnand %p2623_p3, %p2617_p11 }
 0x3f4   : > { %v1433_v47 = vpop.xlane.xlu0 %1432 }
 0x3f5   : > { %2464 = vrcp.f32 %v1433_v47 }
 0x3f6   : > { %v1435_v48 = vpop.xlane.xlu1 %1434 }
 0x3f8   : > { %v1429_v50 = vpop.xlane.xlu0 %1428 }
 0x3f9   : > { %2466 = vrcp.f32 %v1429_v50 }
 0x3fa   : > { %2468 = vrcp.f32 %v1435_v48 }
 0x3fc   : > { %v1431_v54 = vpop.xlane.xlu1 %1430 }
 0x3fd   : > { %2470 = vrcp.f32 %v1431_v54 }
 0x3ff   : > { %v2465_v63 = vpop.eup %2464 }
 0x400   : > { %v1441_v55 = vpop.xlane.xlu0 %1440 }
 0x401   : > { %2472 = vrcp.f32 %v1441_v55 }
 0x403   : > { %v2467_v29 = vpop.eup %2466 }
 0x404   : > { %v1437_v58 = vpop.xlane.xlu0 %1436  ;;  %v2469_v32 = vpop.eup %2468 }
 0x407   : > { %v2471_v13 = vpop.eup %2470 }
 0x408   : > { %v1449_v20 = vpop.xlane.xlu0 %1448 }
 0x409   : > { %2474 = vrcp.f32 %v1449_v20 }
 0x40b   : > { %v2473_v6 = vpop.eup %2472 }
 0x40c   : > { %v1445_v57 = vpop.xlane.xlu0 %1444 }
 0x40d   : > { %2476 = vrcp.f32 %v1445_v57 }
 0x410   : > { %v1453_v21 = vpop.xlane.xlu0 %1452 }
 0x411   : > { %v1443_v60 = vpop.xlane.xlu1 %1442 }
 0x413   : > { %v2475_v8 = vpop.eup %2474 }
 0x414   : > { %v1457_v23 = vpop.xlane.xlu0 %1456 }
 0x415   : > { %v1439_v61 = vpop.xlane.xlu1 %1438 }
 0x417   : > { %v2477_v45 = vpop.eup %2476 }
 0x419   : > { %v1451_v62 = vpop.xlane.xlu1 %1450 }
 0x41a   : > { %2478 = vrcp.f32 %v1451_v62 }
 0x41d   : > { %v1447_v19 = vpop.xlane.xlu1 %1446 }
 0x41e   : > { %2480 = vrcp.f32 %v1447_v19 }
 0x41f   : > { %2482 = vrcp.f32 %v1437_v58 }
 0x420   : > { %2484 = vrcp.f32 %v1443_v60 }
 0x421   : > { %v1455_v0 = vpop.xlane.xlu1 %1454  ;;  %2486 = vrcp.f32 %v1439_v61 }
 0x422   : > { %2488 = vrcp.f32 %v1457_v23 }
 0x423   : > { %2490 = vrcp.f32 %v1453_v21 }
 0x424   : > { %v2479_v49 = vpop.eup %2478 }
 0x425   : > { %v1459_v30 = vpop.xlane.xlu1 %1458 }
 0x426   : > { %2492 = vrcp.f32 %v1459_v30 }
 0x427   : > { %2494 = vrcp.f32 %v1455_v0 }
 0x428   : > { %v2481_v11 = vpop.eup %2480 }
 0x429   : > { %v2483_v7 = vpop.eup %2482 }
 0x42a   : > { %v2485_v56 = vpop.eup %2484 }
 0x42b   : > { %v2487_v22 = vpop.eup %2486 }
 0x42c   : > { %v2489_v35 = vpop.eup %2488 }
 0x42d   : > { %v2491_v37 = vpop.eup %2490 }
 0x430   : > { %v2493_v34 = vpop.eup %2492 }
 0x431   : > { %v2495_v42 = vpop.eup %2494 }
 0x445   : > { %v2161_v4 = vpop.f32.mrb[32].mxu0 }
 0x446   : > { %v1583_v5 = vmul.f32 %v2465_v63, %v2161_v4  ;;  %v1502_v9 = vpop.f32.mrb[33].mxu0 }
 0x447   : > { %v1581_v12 = vmul.f32 %v2467_v29, %v1502_v9  ;;  %v2162_v1 = vpop.f32.mrb[34].mxu0 }
 0x448   : > { %1599 = vst [vmem:[%s3474_s18 + $0x10] sm:$0xff] %v1583_v5  ;;  %v1584_v14 = vmul.f32 %v2469_v32, %v2162_v1  ;;  %v1505_v15 = vpop.f32.mrb[35].mxu0 }
 0x449   : > { %1597 = vst [vmem:[%s3474_s18] sm:$0xff] %v1581_v12  ;;  %v1582_v18 = vmul.f32 %v2471_v13, %v1505_v15 }
 0x44a   : > { %1600 = vst [vmem:[%s3474_s18 + $0x18] sm:$0xff] %v1584_v14 }
 0x44b   : > { %1598 = vst [vmem:[%s3474_s18 + $0x8] sm:$0xff] %v1582_v18 }
 0x456   : > { %v2169_v10 = vpop.f32.mrb[48].mxu1 }
 0x457   : > { %v1591_v51 = vmul.f32 %v2475_v8, %v2169_v10  ;;  %v1534_v46 = vpop.f32.mrb[49].mxu1 }
 0x458   : > { %v1589_v2 = vmul.f32 %v2477_v45, %v1534_v46  ;;  %v2170_v3 = vpop.f32.mrb[50].mxu1 }
 0x459   : > { %1607 = vst [vmem:[%s3474_s18 + $0x50] sm:$0xff] %v1591_v51  ;;  %v1592_v26 = vmul.f32 %v2479_v49, %v2170_v3  ;;  %v2165_v27 = vpop.f32.mrb[36].mxu0  ;;  %v1537_v31 = vpop.f32.mrb[51].mxu1 }
 0x45a   : > { %1605 = vst [vmem:[%s3474_s18 + $0x40] sm:$0xff] %v1589_v2  ;;  %v1587_v33 = vmul.f32 %v2473_v6, %v2165_v27  ;;  %v1590_v52 = vmul.f32 %v2481_v11, %v1537_v31  ;;  %v1518_v53 = vpop.f32.mrb[37].mxu0 }
 0x45b   : > { %1608 = vst [vmem:[%s3474_s18 + $0x58] sm:$0xff] %v1592_v26  ;;  %v1585_v16 = vmul.f32 %v2483_v7, %v1518_v53  ;;  %v2166_v17 = vpop.f32.mrb[38].mxu0 }
 0x45c   : > { %1603 = vst [vmem:[%s3474_s18 + $0x30] sm:$0xff] %v1587_v33  ;;  %1606 = vst [vmem:[%s3474_s18 + $0x48] sm:$0xff] %v1590_v52  ;;  %v1588_v28 = vmul.f32 %v2485_v56, %v2166_v17  ;;  %v1521_v59 = vpop.f32.mrb[39].mxu0 }
 0x45d   : > { %1601 = vst [vmem:[%s3474_s18 + $0x20] sm:$0xff] %v1585_v16  ;;  %v1586_v24 = vmul.f32 %v2487_v22, %v1521_v59 }
 0x45e   : > { %1604 = vst [vmem:[%s3474_s18 + $0x38] sm:$0xff] %v1588_v28 }
 0x45f   : > { %1602 = vst [vmem:[%s3474_s18 + $0x28] sm:$0xff] %v1586_v24 }
 0x461   : > { %v2173_v36 = vpop.f32.mrb[52].mxu1 }
 0x462   : > { %v1595_v38 = vmul.f32 %v2489_v35, %v2173_v36  ;;  %v1550_v39 = vpop.f32.mrb[53].mxu1 }
 0x463   : > { %v1593_v40 = vmul.f32 %v2491_v37, %v1550_v39  ;;  %v2174_v41 = vpop.f32.mrb[54].mxu1 }
 0x464   : > { %1611 = vst [vmem:[%s3474_s18 + $0x70] sm:$0xff] %v1595_v38  ;;  %v1596_v25 = vmul.f32 %v2493_v34, %v2174_v41  ;;  %v1553_v43 = vpop.f32.mrb[55].mxu1 }
 0x465   : > { %1609 = vst [vmem:[%s3474_s18 + $0x60] sm:$0xff] %v1593_v40  ;;  %v1594_v44 = vmul.f32 %v2495_v42, %v1553_v43 }
 0x466   : > { %1612 = vst [vmem:[%s3474_s18 + $0x78] sm:$0xff] %v1596_v25 }
 0x467   : > { %1610 = vst [vmem:[%s3474_s18 + $0x68] sm:$0xff] %v1594_v44 }
 0x468   : > { %2627 = shalt.err (!%p2624_p6)
}
 0x469   : > { %s2628_s16 = scalar_lea.hbm %s3494_s14, 2048  ;;  %s2632_s24 = scalar_lea.hbm %s3630_s15, 8192 }
 0x46a   : > { %p2629_p4 = scmp.ne.s32.totalorder %s3494_s14, %s2628_s16  ;;  %p2633_p7 = scmp.lt.u32.totalorder %s3494_s14, %s3630_s15 }
 0x46b   : > { %p2634_p0 = scmp.lt.u32.totalorder %s2632_s24, %s2628_s16  ;;  %p2636_p8 = scmp.lt.u32.totalorder %s2628_s16, %s3494_s14 }
 0x46c   : > { %p2630_p5 = pnand %p2629_p4, %p3629_p2 }
 0x46d   : > { %p2635_p9 = por %p2634_p0, %p2633_p7 }
 0x46e   : > { %p2631_p1 = pneg %p2630_p5 }
 0x46f   : > { %p2637_p10 = por %p2636_p8, %p2635_p9 }
 0x471   : > { %p2638_p11 = pnand %p2637_p10, %p2631_p1 }
 0x473   : > { %2641 = shalt.err (!%p2638_p11)
}
 0x474   : > { %s2786_s10 = smov 128   ;;  %s2787_s4 = smov 8  }
 0x475   : > { %2200 = dma.vmem_to_hbm [thread:$0]  (%p3629_p2), %s3496_s13, 2048, %s3494_s14, %s1614_s17, %s2786_s10, %s2786_s10, %s2787_s4  }
 0x476 PF: > { %s3631_s20 = sld [smem:[#allocation17_spill]]  ;;  %s3632_s18 = sld [smem:[#allocation27_spill]] }
 0x477   : > { %p2222_p13 = scmp.ge.s32.totalorder %s2772_s6, 2 }
 0x47c   : > { %s1671_s21 = sand.u32 1, %s3631_s20   ;;  %p3633_p12 = scmp.ne.s32.totalorder %s3632_s18, 0 }
 0x47d   : > { %s1672_s9 = scalar_lea.sflag [#allocation5], %s1671_s21 }
 0x47e   : > { %p2215_p3 = pnand %p2222_p13, %p3633_p12 }
 0x480   : > { %2711 = dma.done.wait (!%p2215_p3), %s1672_s9, 2048  }
 0x481   : > { %2713 = vsyncadd (!%p2215_p3), %s1672_s9, 4294965248  ;;  %s1681_s12 = scalar_lea.sflag [#allocation11], %s1671_s21 }
 0x482   : > { %2715 = dma.done.wait (!%p2215_p3), %s1681_s12, 1024  }
 0x483   : > { %2717 = vsyncadd (!%p2215_p3), %s1681_s12, 4294966272  ;;  %s28_s6 = sadd.s32 1, %s2772_s6   ;;  %s3635_s29 = sld [smem:[#allocation18_spill]] }
 0x484   : > { %p3530_p6 = scmp.ge.s32.totalorder %s28_s6, 6   ;;  %s3636_s20 = sld [smem:[#allocation26_spill]] }
 0x485   : > { %s3637_s13 = sld [smem:[#allocation19_spill]]  ;;  %s3638_s23 = sld [smem:[#allocation23_spill]] }
 0x486   : > { %s3639_s14 = sld [smem:[#allocation20_spill]]  ;;  %s3640_s26 = sld [smem:[#allocation25_spill]] }
 0x487   : > { %s3641_s27 = sld [smem:[#allocation21_spill]]  ;;  %s3642_s17 = sld [smem:[#allocation22_spill]] }
 0x488   : > { %s3643_s7 = sld [smem:[#allocation24_spill]]  ;;  %s3644_s18 = smov %s2724_s19 }
 0x489   : > { %s3645_s19 = smov %s3635_s29  ;;  %s3646_s21 = smov %s2736_s22 }
 0x48a   : > { %s3648_s24 = smov %s2748_s25  ;;  %s3650_s28 = smov %s2768_s30 }
 0x48b   : > { %s3647_s22 = smov %s3637_s13  ;;  %27 = sbr.rel (!%p3530_p6) target bundleno = 18 (0x12), region = 129 }
 0x48c   : > { %s3649_s25 = smov %s3639_s14 }
 0x48d   : > { %s3651_s29 = smov %s3642_s17 }
 0x48e   : > { %s3652_s30 = smov %s3643_s7 }
 0x492   :  { %1686 = vsyncpa [#allocation4], 1 }
 0x493   :  { %1688 = vsyncpa [#allocation4 + $0x1], 1 }
 0x494   :  { %1689 = vsyncpa [#allocation7], 1 }
 0x495   :  { %1691 = vsyncpa [#allocation7 + $0x1], 1 }
 0x496   :  { %1692 = vsyncpa [#allocation5], 1 }
 0x497   :  { %1694 = vsyncpa [#allocation5 + $0x1], 1 }
 0x498   :  { %1695 = vsyncpa [#allocation11], 1 }
 0x499   :  { %1697 = vsyncpa [#allocation11 + $0x1], 1 }

</bundles_post_ra>
